<compile_context>
chip_gen: v6e
topology: v6e:2x2x1
jax: 0.10.0
libtpu: 0.0.40
codegen_flags: <defaults>
</compile_context>

<pallas_src>
import functools

import jax
import jax.numpy as jnp
from jax.experimental import pallas as pl
from jax.experimental.pallas import tpu as pltpu

BN_EPS = 1e-5
LANE = 128
NEG_INF = -1e30


def _round_up(x, m):
    return ((x + m - 1) // m) * m


def _vmem_budget_bytes(n_pad, in_pad, hid_pad, out_pad, tile_n):
    """Explicit scoped-VMEM request: real buffer set + ~25% headroom."""
    def vec(cols):  # a (1, cols) f32 row pads to (8, cols) in VMEM
        return 8 * cols * 4

    scratch = (n_pad * hid_pad * 2          # resident pre-BN activations (bf16)
               + tile_n * hid_pad * 2       # xin (bf16)
               + tile_n * hid_pad * 4       # pre-activation z buffer (f32)
               + 4 * vec(hid_pad))          # csum / csumsq / scale / shift
    blocks = 2 * (tile_n * in_pad * 2       # x tile (bf16, double buffered)
                  + in_pad * hid_pad * 2    # w0
                  + hid_pad * hid_pad * 2   # stacked hidden weight block
                  + hid_pad * out_pad * 2   # w_last
                  + 3 * vec(hid_pad)        # b0 / gamma / beta blocks
                  + vec(hid_pad)            # b_hid block
                  + vec(out_pad)            # b_last block
                  + tile_n * out_pad * 4)   # out tile (f32, double buffered)
    return min(int((scratch + blocks) * 1.25) + (2 << 20), 128 << 20)


def _make_kernel(num_layers, n_valid, tile_n, n_rem):
    """Fused MLP kernel. Grid = (layer, batch_tile)."""
    last = num_layers - 1

    def kernel(x_ref, w0_ref, b0_ref, wh_ref, bh_ref, wl_ref, bl_ref,
               g_ref, be_ref, o_ref,
               act_ref, xin_ref, zbuf_ref,
               csum_ref, csumsq_ref, pscale_ref, pshift_ref):
        l = pl.program_id(0)
        i = pl.program_id(1)
        nt = pl.num_programs(1)
        row0 = pl.multiple_of(i * tile_n, tile_n)
        rows = pl.ds(row0, tile_n)

        # ---- Stage A: for layers > 0, apply the previous layer's BatchNorm
        # (finalized full-batch scale/shift) as one fused FMA -> bf16 input.
        @pl.when(l > 0)
        def _():
            h_prev = act_ref[rows, :].astype(jnp.float32)
            xin_ref[...] = (h_prev * pscale_ref[...] + pshift_ref[...]
                            ).astype(jnp.bfloat16)

        # ---- Reset this hidden layer's batch-stat accumulators at tile 0 ----
        @pl.when((i == 0) & (l < last))
        def _():
            csum_ref[...] = jnp.zeros_like(csum_ref)
            csumsq_ref[...] = jnp.zeros_like(csumsq_ref)

        # ---- Linear: bf16 operands on the MXU, f32 accumulation --------------
        @pl.when(l == 0)
        def _():
            zbuf_ref[...] = jnp.dot(
                x_ref[...], w0_ref[...],
                preferred_element_type=jnp.float32) + b0_ref[...]

        @pl.when((l > 0) & (l < last))
        def _():
            zbuf_ref[...] = jnp.dot(
                xin_ref[...], wh_ref[...],
                preferred_element_type=jnp.float32) + bh_ref[...]

        # ---- Hidden layers: ReLU, (masked) stats accumulation, BN finalize ---
        @pl.when(l < last)
        def _():
            h = jnp.maximum(zbuf_ref[...], 0.0)

            def store_and_accum(hv):
                act_ref[rows, :] = hv.astype(jnp.bfloat16)
                # Single sweep: Sum(h) and Sum(h^2) together.
                csum_ref[...] += jnp.sum(hv, axis=0, keepdims=True)
                csumsq_ref[...] += jnp.sum(hv * hv, axis=0, keepdims=True)

            if n_rem == 0:
                # No padded batch rows anywhere: never mask.
                store_and_accum(h)
            else:
                # Only the last tile can contain padded rows.
                @pl.when(i < nt - 1)
                def _():
                    store_and_accum(h)

                @pl.when(i == nt - 1)
                def _():
                    ridx = jax.lax.broadcasted_iota(jnp.int32, h.shape, 0) + row0
                    store_and_accum(jnp.where(ridx < n_valid, h, 0.0))

            # Finalize full-batch mean/var -> fused scale/shift for next pass.
            @pl.when(i == nt - 1)
            def _():
                inv_n = 1.0 / float(n_valid)
                mean = csum_ref[...] * inv_n
                # TODO(synk): single-pass variance (E[h^2]-mean^2) is slightly
                # less accurate than the reference's two-pass form.
                var = jnp.maximum(csumsq_ref[...] * inv_n - mean * mean, 0.0)
                inv_std = jax.lax.rsqrt(var + BN_EPS)
                scale = g_ref[...] * inv_std
                pscale_ref[...] = scale
                pshift_ref[...] = be_ref[...] - mean * scale
            # TODO(synk): dropout omitted (module default p=0.0 -> identity).

        # ---- Output layer: log_softmax (padded lanes carry -1e30 bias) -------
        # NOTE: o_ref's block index only advances during this pass, so the
        # resident block is written back exactly once, after being filled here.
        @pl.when(l == last)
        def _():
            z = jnp.dot(xin_ref[...], wl_ref[...],
                        preferred_element_type=jnp.float32) + bl_ref[...]
            m = jnp.max(z, axis=-1, keepdims=True)
            s = z - m
            lse = jnp.log(jnp.sum(jnp.exp(s), axis=-1, keepdims=True))
            o_ref[...] = s - lse

    return kernel


@functools.partial(jax.jit, static_argnames=("tile_n",))
def mlp_forward(x, params, *, tile_n=256):
    """params: list of dicts. Hidden layers: w,b,gamma,beta. Last: w,b."""
    n, in_dim = x.shape
    num_layers = len(params)
    hid_dim = params[0]["w"].shape[1]
    out_dim = params[-1]["w"].shape[1]
    last = num_layers - 1

    # Decoupled lane-dense padded widths (per layer role) + tile-aligned batch.
    in_pad = _round_up(in_dim, LANE)
    hid_pad = _round_up(hid_dim, LANE)
    out_pad = _round_up(out_dim, LANE)
    n_pad = _round_up(n, tile_n)
    nt = n_pad // tile_n
    n_rem = n % tile_n
    n_mid = max(num_layers - 2, 1)

    # ---- pad parameters (bf16 weights, f32 bias / BN params) -----------------
    w0 = jnp.zeros((in_pad, hid_pad), jnp.bfloat16).at[
        :in_dim, :hid_dim].set(params[0]["w"].astype(jnp.bfloat16))
    b0 = jnp.zeros((1, hid_pad), jnp.float32).at[
        :, :hid_dim].set(params[0]["b"].reshape(1, -1).astype(jnp.float32))

    wh = jnp.zeros((n_mid, hid_pad, hid_pad), jnp.bfloat16)
    bh = jnp.zeros((n_mid, 1, hid_pad), jnp.float32)
    for j in range(num_layers - 2):
        layer = params[j + 1]
        wh = wh.at[j, :hid_dim, :hid_dim].set(layer["w"].astype(jnp.bfloat16))
        bh = bh.at[j, :, :hid_dim].set(
            layer["b"].reshape(1, -1).astype(jnp.float32))

    wl = jnp.zeros((hid_pad, out_pad), jnp.bfloat16).at[
        :hid_dim, :out_dim].set(params[-1]["w"].astype(jnp.bfloat16))
    # Padded logit lanes are excluded from softmax via a huge negative bias.
    bl = jnp.full((1, out_pad), NEG_INF, jnp.float32).at[
        :, :out_dim].set(params[-1]["b"].reshape(1, -1).astype(jnp.float32))

    g = jnp.zeros((num_layers - 1, 1, hid_pad), jnp.float32)
    be = jnp.zeros((num_layers - 1, 1, hid_pad), jnp.float32)
    for j in range(num_layers - 1):
        g = g.at[j, :, :hid_dim].set(
            params[j]["gamma"].reshape(1, -1).astype(jnp.float32))
        be = be.at[j, :, :hid_dim].set(
            params[j]["beta"].reshape(1, -1).astype(jnp.float32))

    # bf16 input on the host: halves layer-0 DMA bytes and the x VMEM blocks.
    x_pad = jnp.zeros((n_pad, in_pad), jnp.bfloat16).at[
        :n, :in_dim].set(x.astype(jnp.bfloat16))

    kernel = _make_kernel(num_layers, n, tile_n, n_rem)
    vmem_bytes = _vmem_budget_bytes(n_pad, in_pad, hid_pad, out_pad, tile_n)

    out = pl.pallas_call(
        kernel,
        out_shape=jax.ShapeDtypeStruct((n_pad, out_pad), jnp.float32),
        grid_spec=pltpu.PrefetchScalarGridSpec(
            num_scalar_prefetch=0,
            grid=(num_layers, nt),
            in_specs=[
                # x: only consumed during layer 0; afterwards the index pins to
                # the last block so there is no refetch at the 0->1 transition.
                pl.BlockSpec((tile_n, in_pad),
                             lambda l, i: (jnp.where(l == 0, i, nt - 1), 0)),
                pl.BlockSpec((in_pad, hid_pad), lambda l, i: (0, 0)),   # w0
                pl.BlockSpec((1, hid_pad), lambda l, i: (0, 0)),        # b0
                pl.BlockSpec((None, hid_pad, hid_pad),                  # w_hid
                             lambda l, i: (jnp.clip(l - 1, 0, n_mid - 1), 0, 0)),
                pl.BlockSpec((None, 1, hid_pad),                        # b_hid
                             lambda l, i: (jnp.clip(l - 1, 0, n_mid - 1), 0, 0)),
                pl.BlockSpec((hid_pad, out_pad), lambda l, i: (0, 0)),  # w_last
                pl.BlockSpec((1, out_pad), lambda l, i: (0, 0)),        # b_last
                pl.BlockSpec((None, 1, hid_pad),                        # gamma
                             lambda l, i: (jnp.minimum(l, last - 1), 0, 0)),
                pl.BlockSpec((None, 1, hid_pad),                        # beta
                             lambda l, i: (jnp.minimum(l, last - 1), 0, 0)),
            ],
            # Output blocks only advance during the last pass -> each block is
            # written back exactly once, carrying the final log-probs.
            out_specs=pl.BlockSpec(
                (tile_n, out_pad),
                lambda l, i: (jnp.where(l == last, i, 0), 0)),
            scratch_shapes=[
                pltpu.VMEM((n_pad, hid_pad), jnp.bfloat16),   # resident pre-BN acts
                pltpu.VMEM((tile_n, hid_pad), jnp.bfloat16),  # BN-applied matmul input
                pltpu.VMEM((tile_n, hid_pad), jnp.float32),   # pre-activation z buffer
                pltpu.VMEM((1, hid_pad), jnp.float32),        # Sum(h)  accumulator
                pltpu.VMEM((1, hid_pad), jnp.float32),        # Sum(h^2) accumulator
                pltpu.VMEM((1, hid_pad), jnp.float32),        # fused BN scale
                pltpu.VMEM((1, hid_pad), jnp.float32),        # fused BN shift
            ],
        ),
        compiler_params=pltpu.CompilerParams(
            # Layer chaining + full-batch BN reduction -> both axes sequential.
            dimension_semantics=("arbitrary", "arbitrary"),
            vmem_limit_bytes=vmem_bytes,
        ),
    )(x_pad, w0, b0, wh, bh, wl, bl, g, be)

    return out[:n, :out_dim]


def mlp_reference(x, params):
    """Pure-JAX f32 reference matching the PyTorch module's forward."""
    h = x
    for layer in params[:-1]:
        z = h @ layer["w"] + layer["b"]
        z = jnp.maximum(z, 0.0)
        mean = jnp.mean(z, axis=0, keepdims=True)
        var = jnp.mean((z - mean) ** 2, axis=0, keepdims=True)
        h = layer["gamma"] * (z - mean) / jnp.sqrt(var + BN_EPS) + layer["beta"]
    z = h @ params[-1]["w"] + params[-1]["b"]
    return jax.nn.log_softmax(z, axis=-1)


def init_params(key, in_dim, hid_dim, out_dim, num_layers):
    assert num_layers >= 2
    dims = [in_dim] + [hid_dim] * (num_layers - 1) + [out_dim]
    params = []
    for i in range(num_layers):
        din, dout = dims[i], dims[i + 1]
        key, kw, kb = jax.random.split(key, 3)
        bound = 1.0 / jnp.sqrt(din)
        # nn.Linear stores W as (out, in); we keep it pre-transposed as (in, out).
        w = jax.random.uniform(kw, (din, dout), jnp.float32, -bound, bound)
        b = jax.random.uniform(kb, (1, dout), jnp.float32, -bound, bound)
        layer = {"w": w, "b": b}
        if i < num_layers - 1:
            # BatchNorm1d.reset_parameters(): weight=1, bias=0
            layer["gamma"] = jnp.ones((1, dout), jnp.float32)
            layer["beta"] = jnp.zeros((1, dout), jnp.float32)
        params.append(layer)
    return params


if __name__ == "__main__":
    key = jax.random.PRNGKey(0)
    key, kx = jax.random.split(key)

    # N deliberately not a multiple of the tile to exercise the last-tile mask.
    N, IN_DIM, HID_DIM, OUT_DIM, NUM_LAYERS = 500, 16, 32, 8, 3
    x = jax.random.normal(kx, (N, IN_DIM), jnp.float32)
    params = init_params(key, IN_DIM, HID_DIM, OUT_DIM, NUM_LAYERS)

    out = mlp_forward(x, params, tile_n=256)
    jax.block_until_ready(out)

    assert out.shape == (N, OUT_DIM)
    # log_softmax rows should exponentiate-sum to ~1
    assert jnp.allclose(jnp.sum(jnp.exp(out), axis=-1), 1.0, atol=1e-3)
    # match the f32 reference (bf16 matmul operands -> loose tolerance)
    ref = mlp_reference(x, params)
    max_err = float(jnp.max(jnp.abs(out - ref)))
    assert max_err < 0.2, f"max abs err vs reference: {max_err}"
    print("KERNEL_OK")
</pallas_src>

<mosaic_0001>
module attributes {stable_mosaic.version = 11 : i64} {
  func.func @kernel(%arg0: i32, %arg1: i32, %arg2: memref<256x128xbf16, #tpu.memory_space<vmem>>, %arg3: memref<128x128xbf16, #tpu.memory_space<vmem>>, %arg4: memref<1x128xf32, #tpu.memory_space<vmem>>, %arg5: memref<1x128x128xbf16, #tpu.memory_space<vmem>>, %arg6: memref<1x1x128xf32, #tpu.memory_space<vmem>>, %arg7: memref<128x128xbf16, #tpu.memory_space<vmem>>, %arg8: memref<1x128xf32, #tpu.memory_space<vmem>>, %arg9: memref<1x1x128xf32, #tpu.memory_space<vmem>>, %arg10: memref<1x1x128xf32, #tpu.memory_space<vmem>>, %arg11: memref<256x128xf32, #tpu.memory_space<vmem>>, %arg12: memref<512x128xbf16, #tpu.memory_space<vmem>>, %arg13: memref<256x128xbf16, #tpu.memory_space<vmem>>, %arg14: memref<256x128xf32, #tpu.memory_space<vmem>>, %arg15: memref<1x128xf32, #tpu.memory_space<vmem>>, %arg16: memref<1x128xf32, #tpu.memory_space<vmem>>, %arg17: memref<1x128xf32, #tpu.memory_space<vmem>>, %arg18: memref<1x128xf32, #tpu.memory_space<vmem>>) attributes {dimension_semantics = [#tpu.dimension_semantics<arbitrary>, #tpu.dimension_semantics<arbitrary>], iteration_bounds = array<i64: 3, 2>, scalar_prefetch = 0 : i64, scratch_operands = 7 : i64, tpu.core_type = #tpu.core_type<tc>, window_params = [{transform_indices = @transform_0, window_bounds = array<i64: 256, 128>}, {pipeline_mode = #tpu.pipeline_mode<synchronous>, transform_indices = @transform_1, window_bounds = array<i64: 128, 128>}, {pipeline_mode = #tpu.pipeline_mode<synchronous>, transform_indices = @transform_2, window_bounds = array<i64: 1, 128>}, {transform_indices = @transform_3, window_bounds = array<i64: 1, 128, 128>}, {transform_indices = @transform_4, window_bounds = array<i64: 1, 1, 128>}, {pipeline_mode = #tpu.pipeline_mode<synchronous>, transform_indices = @transform_5, window_bounds = array<i64: 128, 128>}, {pipeline_mode = #tpu.pipeline_mode<synchronous>, transform_indices = @transform_6, window_bounds = array<i64: 1, 128>}, {transform_indices = @transform_7, window_bounds = array<i64: 1, 1, 128>}, {transform_indices = @transform_8, window_bounds = array<i64: 1, 1, 128>}, {transform_indices = @transform_9, window_bounds = array<i64: 256, 128>}]} {
    %c256_i32 = arith.constant 256 : i32
    %0 = arith.muli %arg1, %c256_i32 : i32
    %1 = tpu.assume_multiple %0, 256 : i32
    %c0_i32 = arith.constant 0 : i32
    %2 = arith.cmpi sgt, %arg0, %c0_i32 : i32
    %3 = arith.extui %2 : i1 to i32
    %c0_i32_0 = arith.constant 0 : i32
    %4 = arith.cmpi ne, %3, %c0_i32_0 : i32
    scf.if %4 {
      %24 = arith.index_cast %1 : i32 to index
      %c0 = arith.constant 0 : index
      %25 = vector.load %arg12[%24, %c0] : memref<512x128xbf16, #tpu.memory_space<vmem>>, vector<256x128xbf16>
      %26 = arith.extf %25 : vector<256x128xbf16> to vector<256x128xf32>
      %c0_12 = arith.constant 0 : index
      %c0_13 = arith.constant 0 : index
      %27 = vector.load %arg17[%c0_12, %c0_13] : memref<1x128xf32, #tpu.memory_space<vmem>>, vector<1x128xf32>
      %28 = vector.broadcast %27 : vector<1x128xf32> to vector<256x128xf32>
      %29 = arith.mulf %26, %28 : vector<256x128xf32>
      %c0_14 = arith.constant 0 : index
      %c0_15 = arith.constant 0 : index
      %30 = vector.load %arg18[%c0_14, %c0_15] : memref<1x128xf32, #tpu.memory_space<vmem>>, vector<1x128xf32>
      %31 = vector.broadcast %30 : vector<1x128xf32> to vector<256x128xf32>
      %32 = arith.addf %29, %31 : vector<256x128xf32>
      %33 = arith.truncf %32 : vector<256x128xf32> to vector<256x128xbf16>
      %c0_16 = arith.constant 0 : index
      %c0_17 = arith.constant 0 : index
      %34 = vector.load %arg13[%c0_16, %c0_17] : memref<256x128xbf16, #tpu.memory_space<vmem>>, vector<256x128xbf16>
      tpu.vector_store %arg13[%c0_16, %c0_17], %33 {strides = array<i32>} : memref<256x128xbf16, #tpu.memory_space<vmem>>, vector<256x128xbf16>,
    } else {
    }
    %c0_i32_1 = arith.constant 0 : i32
    %5 = arith.cmpi eq, %arg1, %c0_i32_1 : i32
    %c2_i32 = arith.constant 2 : i32
    %6 = arith.cmpi slt, %arg0, %c2_i32 : i32
    %7 = arith.andi %5, %6 : i1
    %8 = arith.extui %7 : i1 to i32
    %c0_i32_2 = arith.constant 0 : i32
    %9 = arith.cmpi ne, %8, %c0_i32_2 : i32
    scf.if %9 {
      %cst = arith.constant 0.000000e+00 : f32
      %24 = vector.broadcast %cst : f32 to vector<1x128xf32>
      %c0 = arith.constant 0 : index
      %c0_12 = arith.constant 0 : index
      %25 = vector.load %arg15[%c0, %c0_12] : memref<1x128xf32, #tpu.memory_space<vmem>>, vector<1x128xf32>
      tpu.vector_store %arg15[%c0, %c0_12], %24 {strides = array<i32>} : memref<1x128xf32, #tpu.memory_space<vmem>>, vector<1x128xf32>,
      %cst_13 = arith.constant 0.000000e+00 : f32
      %26 = vector.broadcast %cst_13 : f32 to vector<1x128xf32>
      %c0_14 = arith.constant 0 : index
      %c0_15 = arith.constant 0 : index
      %27 = vector.load %arg16[%c0_14, %c0_15] : memref<1x128xf32, #tpu.memory_space<vmem>>, vector<1x128xf32>
      tpu.vector_store %arg16[%c0_14, %c0_15], %26 {strides = array<i32>} : memref<1x128xf32, #tpu.memory_space<vmem>>, vector<1x128xf32>,
    } else {
    }
    %c0_i32_3 = arith.constant 0 : i32
    %10 = arith.cmpi eq, %arg0, %c0_i32_3 : i32
    %11 = arith.extui %10 : i1 to i32
    %c0_i32_4 = arith.constant 0 : i32
    %12 = arith.cmpi ne, %11, %c0_i32_4 : i32
    scf.if %12 {
      %c0 = arith.constant 0 : index
      %c0_12 = arith.constant 0 : index
      %24 = vector.load %arg2[%c0, %c0_12] : memref<256x128xbf16, #tpu.memory_space<vmem>>, vector<256x128xbf16>
      %c0_13 = arith.constant 0 : index
      %c0_14 = arith.constant 0 : index
      %25 = vector.load %arg3[%c0_13, %c0_14] : memref<128x128xbf16, #tpu.memory_space<vmem>>, vector<128x128xbf16>
      %cst = arith.constant dense<0.000000e+00> : vector<256x128xf32>
      %26 = tpu.matmul %24, %25, %cst {dimension_numbers = #tpu.dot_dimension_numbers<[1], [0], [0], [1], [0, 0, 1, 1], [], []>} : vector<256x128xbf16>, vector<128x128xbf16>, vector<256x128xf32> -> vector<256x128xf32>
      %c0_15 = arith.constant 0 : index
      %c0_16 = arith.constant 0 : index
      %27 = vector.load %arg4[%c0_15, %c0_16] : memref<1x128xf32, #tpu.memory_space<vmem>>, vector<1x128xf32>
      %28 = vector.broadcast %27 : vector<1x128xf32> to vector<256x128xf32>
      %29 = arith.addf %26, %28 : vector<256x128xf32>
      %c0_17 = arith.constant 0 : index
      %c0_18 = arith.constant 0 : index
      %30 = vector.load %arg14[%c0_17, %c0_18] : memref<256x128xf32, #tpu.memory_space<vmem>>, vector<256x128xf32>
      tpu.vector_store %arg14[%c0_17, %c0_18], %29 {strides = array<i32>} : memref<256x128xf32, #tpu.memory_space<vmem>>, vector<256x128xf32>,
    } else {
    }
    %c0_i32_5 = arith.constant 0 : i32
    %13 = arith.cmpi sgt, %arg0, %c0_i32_5 : i32
    %c2_i32_6 = arith.constant 2 : i32
    %14 = arith.cmpi slt, %arg0, %c2_i32_6 : i32
    %15 = arith.andi %13, %14 : i1
    %16 = arith.extui %15 : i1 to i32
    %c0_i32_7 = arith.constant 0 : i32
    %17 = arith.cmpi ne, %16, %c0_i32_7 : i32
    scf.if %17 {
      %c0 = arith.constant 0 : index
      %c0_12 = arith.constant 0 : index
      %24 = vector.load %arg13[%c0, %c0_12] : memref<256x128xbf16, #tpu.memory_space<vmem>>, vector<256x128xbf16>
      %c0_13 = arith.constant 0 : index
      %c0_14 = arith.constant 0 : index
      %c0_15 = arith.constant 0 : index
      %25 = vector.load %arg5[%c0_13, %c0_14, %c0_15] : memref<1x128x128xbf16, #tpu.memory_space<vmem>>, vector<1x128x128xbf16>
      %26 = vector.shape_cast %25 : vector<1x128x128xbf16> to vector<128x128xbf16>
      %cst = arith.constant dense<0.000000e+00> : vector<256x128xf32>
      %27 = tpu.matmul %24, %26, %cst {dimension_numbers = #tpu.dot_dimension_numbers<[1], [0], [0], [1], [0, 0, 1, 1], [], []>} : vector<256x128xbf16>, vector<128x128xbf16>, vector<256x128xf32> -> vector<256x128xf32>
      %c0_16 = arith.constant 0 : index
      %c0_17 = arith.constant 0 : index
      %c0_18 = arith.constant 0 : index
      %28 = vector.load %arg6[%c0_16, %c0_17, %c0_18] : memref<1x1x128xf32, #tpu.memory_space<vmem>>, vector<1x1x128xf32>
      %29 = vector.shape_cast %28 : vector<1x1x128xf32> to vector<1x128xf32>
      %30 = vector.broadcast %29 : vector<1x128xf32> to vector<256x128xf32>
      %31 = arith.addf %27, %30 : vector<256x128xf32>
      %c0_19 = arith.constant 0 : index
      %c0_20 = arith.constant 0 : index
      %32 = vector.load %arg14[%c0_19, %c0_20] : memref<256x128xf32, #tpu.memory_space<vmem>>, vector<256x128xf32>
      tpu.vector_store %arg14[%c0_19, %c0_20], %31 {strides = array<i32>} : memref<256x128xf32, #tpu.memory_space<vmem>>, vector<256x128xf32>,
    } else {
    }
    %c2_i32_8 = arith.constant 2 : i32
    %18 = arith.cmpi slt, %arg0, %c2_i32_8 : i32
    %19 = arith.extui %18 : i1 to i32
    %c0_i32_9 = arith.constant 0 : i32
    %20 = arith.cmpi ne, %19, %c0_i32_9 : i32
    scf.if %20 {
      %c0 = arith.constant 0 : index
      %c0_12 = arith.constant 0 : index
      %24 = vector.load %arg14[%c0, %c0_12] : memref<256x128xf32, #tpu.memory_space<vmem>>, vector<256x128xf32>
      %cst = arith.constant 0.000000e+00 : f32
      %25 = vector.broadcast %cst : f32 to vector<256x128xf32>
      %26 = arith.maximumf %24, %25 : vector<256x128xf32>
      %c1_i32 = arith.constant 1 : i32
      %27 = arith.cmpi slt, %arg1, %c1_i32 : i32
      %28 = arith.extui %27 : i1 to i32
      %c0_i32_13 = arith.constant 0 : i32
      %29 = arith.cmpi ne, %28, %c0_i32_13 : i32
      scf.if %29 {
        %36 = arith.truncf %26 : vector<256x128xf32> to vector<256x128xbf16>
        %37 = arith.index_cast %1 : i32 to index
        %c0_18 = arith.constant 0 : index
        %38 = vector.load %arg12[%37, %c0_18] : memref<512x128xbf16, #tpu.memory_space<vmem>>, vector<256x128xbf16>
        tpu.vector_store %arg12[%37, %c0_18], %36 {strides = array<i32>} : memref<512x128xbf16, #tpu.memory_space<vmem>>, vector<256x128xbf16>,
        %c0_19 = arith.constant 0 : index
        %c0_20 = arith.constant 0 : index
        %39 = vector.load %arg15[%c0_19, %c0_20] : memref<1x128xf32, #tpu.memory_space<vmem>>, vector<1x128xf32>
        %cst_21 = arith.constant dense<0.000000e+00> : vector<128xf32>
        %40 = vector.multi_reduction <add>, %26, %cst_21 [0] : vector<256x128xf32> to vector<128xf32>
        %41 = vector.shape_cast %40 : vector<128xf32> to vector<1x128xf32>
        %42 = arith.addf %39, %41 : vector<1x128xf32>
        %c0_22 = arith.constant 0 : index
        %c0_23 = arith.constant 0 : index
        %43 = vector.load %arg15[%c0_22, %c0_23] : memref<1x128xf32, #tpu.memory_space<vmem>>, vector<1x128xf32>
        tpu.vector_store %arg15[%c0_22, %c0_23], %42 {strides = array<i32>} : memref<1x128xf32, #tpu.memory_space<vmem>>, vector<1x128xf32>,
        %c0_24 = arith.constant 0 : index
        %c0_25 = arith.constant 0 : index
        %44 = vector.load %arg16[%c0_24, %c0_25] : memref<1x128xf32, #tpu.memory_space<vmem>>, vector<1x128xf32>
        %45 = arith.mulf %26, %26 : vector<256x128xf32>
        %cst_26 = arith.constant dense<0.000000e+00> : vector<128xf32>
        %46 = vector.multi_reduction <add>, %45, %cst_26 [0] : vector<256x128xf32> to vector<128xf32>
        %47 = vector.shape_cast %46 : vector<128xf32> to vector<1x128xf32>
        %48 = arith.addf %44, %47 : vector<1x128xf32>
        %c0_27 = arith.constant 0 : index
        %c0_28 = arith.constant 0 : index
        %49 = vector.load %arg16[%c0_27, %c0_28] : memref<1x128xf32, #tpu.memory_space<vmem>>, vector<1x128xf32>
        tpu.vector_store %arg16[%c0_27, %c0_28], %48 {strides = array<i32>} : memref<1x128xf32, #tpu.memory_space<vmem>>, vector<1x128xf32>,
      } else {
      }
      %c1_i32_14 = arith.constant 1 : i32
      %30 = arith.cmpi eq, %arg1, %c1_i32_14 : i32
      %31 = arith.extui %30 : i1 to i32
      %c0_i32_15 = arith.constant 0 : i32
      %32 = arith.cmpi ne, %31, %c0_i32_15 : i32
      scf.if %32 {
        %36 = tpu.iota {dimensions = array<i32: 0>} : vector<256x128xi32>
        %37 = vector.broadcast %1 : i32 to vector<256x128xi32>
        %38 = arith.addi %36, %37 : vector<256x128xi32>
        %c500_i32 = arith.constant 500 : i32
        %39 = vector.broadcast %c500_i32 : i32 to vector<256x128xi32>
        %40 = arith.cmpi slt, %38, %39 : vector<256x128xi32>
        %cst_18 = arith.constant 0.000000e+00 : f32
        %41 = vector.broadcast %cst_18 : f32 to vector<256x128xf32>
        %42 = arith.select %40, %26, %41 : vector<256x128xi1>, vector<256x128xf32>
        %43 = arith.truncf %42 : vector<256x128xf32> to vector<256x128xbf16>
        %44 = arith.index_cast %1 : i32 to index
        %c0_19 = arith.constant 0 : index
        %45 = vector.load %arg12[%44, %c0_19] : memref<512x128xbf16, #tpu.memory_space<vmem>>, vector<256x128xbf16>
        tpu.vector_store %arg12[%44, %c0_19], %43 {strides = array<i32>} : memref<512x128xbf16, #tpu.memory_space<vmem>>, vector<256x128xbf16>,
        %c0_20 = arith.constant 0 : index
        %c0_21 = arith.constant 0 : index
        %46 = vector.load %arg15[%c0_20, %c0_21] : memref<1x128xf32, #tpu.memory_space<vmem>>, vector<1x128xf32>
        %cst_22 = arith.constant dense<0.000000e+00> : vector<128xf32>
        %47 = vector.multi_reduction <add>, %42, %cst_22 [0] : vector<256x128xf32> to vector<128xf32>
        %48 = vector.shape_cast %47 : vector<128xf32> to vector<1x128xf32>
        %49 = arith.addf %46, %48 : vector<1x128xf32>
        %c0_23 = arith.constant 0 : index
        %c0_24 = arith.constant 0 : index
        %50 = vector.load %arg15[%c0_23, %c0_24] : memref<1x128xf32, #tpu.memory_space<vmem>>, vector<1x128xf32>
        tpu.vector_store %arg15[%c0_23, %c0_24], %49 {strides = array<i32>} : memref<1x128xf32, #tpu.memory_space<vmem>>, vector<1x128xf32>,
        %c0_25 = arith.constant 0 : index
        %c0_26 = arith.constant 0 : index
        %51 = vector.load %arg16[%c0_25, %c0_26] : memref<1x128xf32, #tpu.memory_space<vmem>>, vector<1x128xf32>
        %52 = arith.mulf %42, %42 : vector<256x128xf32>
        %cst_27 = arith.constant dense<0.000000e+00> : vector<128xf32>
        %53 = vector.multi_reduction <add>, %52, %cst_27 [0] : vector<256x128xf32> to vector<128xf32>
        %54 = vector.shape_cast %53 : vector<128xf32> to vector<1x128xf32>
        %55 = arith.addf %51, %54 : vector<1x128xf32>
        %c0_28 = arith.constant 0 : index
        %c0_29 = arith.constant 0 : index
        %56 = vector.load %arg16[%c0_28, %c0_29] : memref<1x128xf32, #tpu.memory_space<vmem>>, vector<1x128xf32>
        tpu.vector_store %arg16[%c0_28, %c0_29], %55 {strides = array<i32>} : memref<1x128xf32, #tpu.memory_space<vmem>>, vector<1x128xf32>,
      } else {
      }
      %c1_i32_16 = arith.constant 1 : i32
      %33 = arith.cmpi eq, %arg1, %c1_i32_16 : i32
      %34 = arith.extui %33 : i1 to i32
      %c0_i32_17 = arith.constant 0 : i32
      %35 = arith.cmpi ne, %34, %c0_i32_17 : i32
      scf.if %35 {
        %c0_18 = arith.constant 0 : index
        %c0_19 = arith.constant 0 : index
        %36 = vector.load %arg15[%c0_18, %c0_19] : memref<1x128xf32, #tpu.memory_space<vmem>>, vector<1x128xf32>
        %cst_20 = arith.constant 2.000000e-03 : f32
        %37 = vector.broadcast %cst_20 : f32 to vector<1x128xf32>
        %38 = arith.mulf %36, %37 : vector<1x128xf32>
        %c0_21 = arith.constant 0 : index
        %c0_22 = arith.constant 0 : index
        %39 = vector.load %arg16[%c0_21, %c0_22] : memref<1x128xf32, #tpu.memory_space<vmem>>, vector<1x128xf32>
        %cst_23 = arith.constant 2.000000e-03 : f32
        %40 = vector.broadcast %cst_23 : f32 to vector<1x128xf32>
        %41 = arith.mulf %39, %40 : vector<1x128xf32>
        %42 = arith.mulf %38, %38 : vector<1x128xf32>
        %43 = arith.subf %41, %42 : vector<1x128xf32>
        %cst_24 = arith.constant 0.000000e+00 : f32
        %44 = vector.broadcast %cst_24 : f32 to vector<1x128xf32>
        %45 = arith.maximumf %43, %44 : vector<1x128xf32>
        %cst_25 = arith.constant 9.99999974E-6 : f32
        %46 = vector.broadcast %cst_25 : f32 to vector<1x128xf32>
        %47 = arith.addf %45, %46 : vector<1x128xf32>
        %48 = math.rsqrt %47 : vector<1x128xf32>
        %c0_26 = arith.constant 0 : index
        %c0_27 = arith.constant 0 : index
        %c0_28 = arith.constant 0 : index
        %49 = vector.load %arg9[%c0_26, %c0_27, %c0_28] : memref<1x1x128xf32, #tpu.memory_space<vmem>>, vector<1x1x128xf32>
        %50 = vector.shape_cast %49 : vector<1x1x128xf32> to vector<1x128xf32>
        %51 = arith.mulf %50, %48 : vector<1x128xf32>
        %c0_29 = arith.constant 0 : index
        %c0_30 = arith.constant 0 : index
        %52 = vector.load %arg17[%c0_29, %c0_30] : memref<1x128xf32, #tpu.memory_space<vmem>>, vector<1x128xf32>
        tpu.vector_store %arg17[%c0_29, %c0_30], %51 {strides = array<i32>} : memref<1x128xf32, #tpu.memory_space<vmem>>, vector<1x128xf32>,
        %c0_31 = arith.constant 0 : index
        %c0_32 = arith.constant 0 : index
        %c0_33 = arith.constant 0 : index
        %53 = vector.load %arg10[%c0_31, %c0_32, %c0_33] : memref<1x1x128xf32, #tpu.memory_space<vmem>>, vector<1x1x128xf32>
        %54 = vector.shape_cast %53 : vector<1x1x128xf32> to vector<1x128xf32>
        %55 = arith.mulf %38, %51 : vector<1x128xf32>
        %56 = arith.subf %54, %55 : vector<1x128xf32>
        %c0_34 = arith.constant 0 : index
        %c0_35 = arith.constant 0 : index
        %57 = vector.load %arg18[%c0_34, %c0_35] : memref<1x128xf32, #tpu.memory_space<vmem>>, vector<1x128xf32>
        tpu.vector_store %arg18[%c0_34, %c0_35], %56 {strides = array<i32>} : memref<1x128xf32, #tpu.memory_space<vmem>>, vector<1x128xf32>,
      } else {
      }
    } else {
    }
    %c2_i32_10 = arith.constant 2 : i32
    %21 = arith.cmpi eq, %arg0, %c2_i32_10 : i32
    %22 = arith.extui %21 : i1 to i32
    %c0_i32_11 = arith.constant 0 : i32
    %23 = arith.cmpi ne, %22, %c0_i32_11 : i32
    scf.if %23 {
      %c0 = arith.constant 0 : index
      %c0_12 = arith.constant 0 : index
      %24 = vector.load %arg13[%c0, %c0_12] : memref<256x128xbf16, #tpu.memory_space<vmem>>, vector<256x128xbf16>
      %c0_13 = arith.constant 0 : index
      %c0_14 = arith.constant 0 : index
      %25 = vector.load %arg7[%c0_13, %c0_14] : memref<128x128xbf16, #tpu.memory_space<vmem>>, vector<128x128xbf16>
      %cst = arith.constant dense<0.000000e+00> : vector<256x128xf32>
      %26 = tpu.matmul %24, %25, %cst {dimension_numbers = #tpu.dot_dimension_numbers<[1], [0], [0], [1], [0, 0, 1, 1], [], []>} : vector<256x128xbf16>, vector<128x128xbf16>, vector<256x128xf32> -> vector<256x128xf32>
      %c0_15 = arith.constant 0 : index
      %c0_16 = arith.constant 0 : index
      %27 = vector.load %arg8[%c0_15, %c0_16] : memref<1x128xf32, #tpu.memory_space<vmem>>, vector<1x128xf32>
      %28 = vector.broadcast %27 : vector<1x128xf32> to vector<256x128xf32>
      %29 = arith.addf %26, %28 : vector<256x128xf32>
      %cst_17 = arith.constant dense<0xFF800000> : vector<256xf32>
      %30 = vector.multi_reduction <maximumf>, %29, %cst_17 [1] : vector<256x128xf32> to vector<256xf32>
      %31 = vector.shape_cast %30 : vector<256xf32> to vector<256x1xf32>
      %32 = vector.broadcast %31 : vector<256x1xf32> to vector<256x128xf32>
      %33 = arith.subf %29, %32 : vector<256x128xf32>
      %34 = math.exp %33 : vector<256x128xf32>
      %cst_18 = arith.constant dense<0.000000e+00> : vector<256xf32>
      %35 = vector.multi_reduction <add>, %34, %cst_18 [1] : vector<256x128xf32> to vector<256xf32>
      %36 = vector.shape_cast %35 : vector<256xf32> to vector<256x1xf32>
      %37 = math.log %36 : vector<256x1xf32>
      %38 = vector.broadcast %37 : vector<256x1xf32> to vector<256x128xf32>
      %39 = arith.subf %33, %38 : vector<256x128xf32>
      %c0_19 = arith.constant 0 : index
      %c0_20 = arith.constant 0 : index
      %40 = vector.load %arg11[%c0_19, %c0_20] : memref<256x128xf32, #tpu.memory_space<vmem>>, vector<256x128xf32>
      tpu.vector_store %arg11[%c0_19, %c0_20], %39 {strides = array<i32>} : memref<256x128xf32, #tpu.memory_space<vmem>>, vector<256x128xf32>,
    } else {
    }
    return
  }
  func.func @transform_0(%arg0: i32, %arg1: i32) -> (i32, i32) {
    %c0_i32 = arith.constant 0 : i32
    %0 = arith.cmpi eq, %arg0, %c0_i32 : i32
    %c1_i32 = arith.constant 1 : i32
    %1 = arith.select %0, %arg1, %c1_i32 : i32
    %c0_i32_0 = arith.constant 0 : i32
    %c0_i32_1 = arith.constant 0 : i32
    return %1, %c0_i32_0 : i32, i32
  }
  func.func @transform_1(%arg0: i32, %arg1: i32) -> (i32, i32) {
    %c0_i32 = arith.constant 0 : i32
    %c0_i32_0 = arith.constant 0 : i32
    %c0_i32_1 = arith.constant 0 : i32
    return %c0_i32, %c0_i32_0 : i32, i32
  }
  func.func @transform_2(%arg0: i32, %arg1: i32) -> (i32, i32) {
    %c0_i32 = arith.constant 0 : i32
    %c0_i32_0 = arith.constant 0 : i32
    %c0_i32_1 = arith.constant 0 : i32
    return %c0_i32, %c0_i32_0 : i32, i32
  }
  func.func @transform_3(%arg0: i32, %arg1: i32) -> (i32, i32, i32) {
    %c1_i32 = arith.constant 1 : i32
    %0 = arith.subi %arg0, %c1_i32 : i32
    %c0_i32 = arith.constant 0 : i32
    %c0_i32_0 = arith.constant 0 : i32
    %1 = arith.maxsi %c0_i32, %0 : i32
    %2 = arith.minsi %c0_i32_0, %1 : i32
    %c0_i32_1 = arith.constant 0 : i32
    %c0_i32_2 = arith.constant 0 : i32
    %c0_i32_3 = arith.constant 0 : i32
    return %2, %c0_i32_1, %c0_i32_2 : i32, i32, i32
  }
  func.func @transform_4(%arg0: i32, %arg1: i32) -> (i32, i32, i32) {
    %c1_i32 = arith.constant 1 : i32
    %0 = arith.subi %arg0, %c1_i32 : i32
    %c0_i32 = arith.constant 0 : i32
    %c0_i32_0 = arith.constant 0 : i32
    %1 = arith.maxsi %c0_i32, %0 : i32
    %2 = arith.minsi %c0_i32_0, %1 : i32
    %c0_i32_1 = arith.constant 0 : i32
    %c0_i32_2 = arith.constant 0 : i32
    %c0_i32_3 = arith.constant 0 : i32
    return %2, %c0_i32_1, %c0_i32_2 : i32, i32, i32
  }
  func.func @transform_5(%arg0: i32, %arg1: i32) -> (i32, i32) {
    %c0_i32 = arith.constant 0 : i32
    %c0_i32_0 = arith.constant 0 : i32
    %c0_i32_1 = arith.constant 0 : i32
    return %c0_i32, %c0_i32_0 : i32, i32
  }
  func.func @transform_6(%arg0: i32, %arg1: i32) -> (i32, i32) {
    %c0_i32 = arith.constant 0 : i32
    %c0_i32_0 = arith.constant 0 : i32
    %c0_i32_1 = arith.constant 0 : i32
    return %c0_i32, %c0_i32_0 : i32, i32
  }
  func.func @transform_7(%arg0: i32, %arg1: i32) -> (i32, i32, i32) {
    %c1_i32 = arith.constant 1 : i32
    %0 = arith.minsi %arg0, %c1_i32 : i32
    %c0_i32 = arith.constant 0 : i32
    %c0_i32_0 = arith.constant 0 : i32
    %c0_i32_1 = arith.constant 0 : i32
    return %0, %c0_i32, %c0_i32_0 : i32, i32, i32
  }
  func.func @transform_8(%arg0: i32, %arg1: i32) -> (i32, i32, i32) {
    %c1_i32 = arith.constant 1 : i32
    %0 = arith.minsi %arg0, %c1_i32 : i32
    %c0_i32 = arith.constant 0 : i32
    %c0_i32_0 = arith.constant 0 : i32
    %c0_i32_1 = arith.constant 0 : i32
    return %0, %c0_i32, %c0_i32_0 : i32, i32, i32
  }
  func.func @transform_9(%arg0: i32, %arg1: i32) -> (i32, i32) {
    %c2_i32 = arith.constant 2 : i32
    %0 = arith.cmpi eq, %arg0, %c2_i32 : i32
    %c0_i32 = arith.constant 0 : i32
    %1 = arith.select %0, %arg1, %c0_i32 : i32
    %c0_i32_0 = arith.constant 0 : i32
    %c0_i32_1 = arith.constant 0 : i32
    return %1, %c0_i32_0 : i32, i32
  }
}

</mosaic_0001>

<bundles_post_ra>
// kernel: mlp_forward.1
= control target key start
LH: loop header
LB: loop body
LE: loop exit
PB: predicated region body
PF: predicated region fallthrough
CT: control target
= control target key end

     0   :  { %s4548_s30 = smov 0   ;;  %s4550_s10 = smov 0   ;;  %s5784_s0 = inlined_call_operand.vmem [shape: bf16[512,128], index: 0, kind: input, shape index: {}]   ;;  %s5785_s1 = inlined_call_operand.vmem [shape: bf16[128,128], index: 1, kind: input, shape index: {}]   ;;  %s5786_s2 = inlined_call_operand.vmem [shape: f32[1,128], index: 2, kind: input, shape index: {}]   ;;  %s5787_s3 = inlined_call_operand.vmem [shape: bf16[1,128,128], index: 3, kind: input, shape index: {}]   ;;  %s5788_s4 = inlined_call_operand.vmem [shape: f32[1,1,128], index: 4, kind: input, shape index: {}]   ;;  %s5789_s5 = inlined_call_operand.vmem [shape: bf16[128,128], index: 5, kind: input, shape index: {}]   ;;  %s5790_s6 = inlined_call_operand.vmem [shape: f32[1,128], index: 6, kind: input, shape index: {}]   ;;  %s5791_s7 = inlined_call_operand.vmem [shape: f32[2,1,128], index: 7, kind: input, shape index: {}]   ;;  %s5792_s8 = inlined_call_operand.vmem [shape: f32[2,1,128], index: 8, kind: input, shape index: {}]   ;;  %s5793_s9 = inlined_call_operand.vmem [shape: f32[512,128], index: 9, kind: output, shape index: {}]  }
   0x1   :  { %s4552_s11 = smov 0   ;;  %s4554_s12 = smov 0  }
   0x2   :  { %s4556_s13 = smov 0  }
   0x3 LB: > { %5808 = sst [smem:[#allocation9_spill]] %s4487_s11  ;;  %s28_s14 = sadd.s32 1, %s4487_s11  ;;  %s4495_s13 = sphi %s4556_s13, %s19_s13   ;;  %s4491_s12 = sphi %s4554_s12, %s5855_s12   ;;  %s4487_s11 = sphi %s4552_s11, %s5854_s11   ;;  %s4483_s10 = sphi %s4550_s10, %s5853_s10   ;;  %s4479_s30 = sphi %s4548_s30, %s5852_s30  }
   0x4   : > { %5809 = sst [smem:[#allocation10_spill]] %s4491_s12  ;;  %s31_s15 = sadd.s32 1, %s4491_s12 }
   0x5   : > { %p29_p0 = scmp.ge.s32.totalorder %s28_s14, 2  ;;  %p3280_p1 = scmp.ge.s32.totalorder %s4495_s13, 1 }
   0x6   : > { %p402_p2 = scmp.lt.s32.totalorder %s4495_s13, 7 }
   0x7   : > { %s5857_s14 = smov (%p29_p0, %s28_s14), 0  ;;  %s5859_s15 = smov (!%p29_p0, %s31_s15), %s4491_s12 }
   0x8   : > { %5810 = sst [smem:[#allocation11_spill]] %s5857_s14  ;;  %p403_p3 = pnand %p3280_p1, %p402_p2 }
   0x9   : > { %p33_p4 = scmp.ge.s32.totalorder %s5859_s15, 3  ;;  %p470_p5 = scmp.eq.s32.totalorder (!%p403_p3), %s4483_s10, 0 }
   0xa   : > { %406 = sbr.rel (%p403_p3) target bundleno = 1487 (0x5cf), region = 56  ;;  %p508_p6 = scmp.lt.s32.totalorder (!%p403_p3), %s4483_s10, 1 }
   0xb   : > { %s5861_s15 = smov (%p33_p4, %s5859_s15), 0  ;;  %s4585_s16 = sshll.u32 (!%p403_p3), %s4479_s30, 8 }
   0xc   : > { %5811 = sst [smem:[#allocation12_spill]] %s5861_s15  ;;  %p534_p7 = scmp.gt.s32.totalorder (!%p403_p3), %s4483_s10, 0 }
   0xd   : > { %p522_p9 = scmp.eq.s32.totalorder (!%p403_p3), %s4483_s10, 2  ;;  %p3306_p11 = scmp.le.s32.totalorder (!%p403_p3), %s4483_s10, 0 }
   0xf   : > { %s471_s17 = scalar_select %p470_p5, %s4479_s30, 1 }
  0x10   : > { %s509_s18 = scalar_select %p508_p6, %s4483_s10, 1 }
  0x11   : > { %s3281_s19 = sshll.u32 %s471_s17, 5 }
  0x12   : > { %p473_p8 = scmp.lt.s32.totalorder %s3281_s19, 63  ;;  %s5863_s18 = smov (!%p508_p6, %s509_s18), 1 }
  0x13   : > { %s512_s22 = scalar_lea.vmem %s5791_s7, %s5863_s18  ;;  %s519_s25 = scalar_lea.vmem %s5792_s8, %s5863_s18 }
  0x14   : > { %s5865_s19 = smov (!%p473_p8, %s3281_s19), 63 }
  0x15   : > { %s3282_s26 = sshll.u32 %s5865_s19, 2  ;;  %s538_s19 = sshra.s32 (!%p3306_p11), %s4585_s16, 3 }
  0x16   : > { %s4604_s29 = scalar_lea.vmem %s5784_s0, %s3282_s26  ;;  %s3307_s21 = sshll.u32 (!%p3306_p11), %s538_s19, 2 }
  0x17   : > { %s523_s17 = scalar_select %p522_p9, %s4479_s30, 0 }
  0x18   : > { %s4616_s23 = scalar_lea.vmem (!%p3306_p11), [#allocation2], %s3307_s21 }
  0x19   : > { %s3303_s15 = sshll.u32 %s523_s17, 5 }
  0x1a   : > { %p525_p10 = scmp.lt.s32.totalorder %s3303_s15, 63  ;;  %537 = sbr.rel (%p3306_p11) target bundleno = 65 (0x41), region = 60 }
  0x1c   : > { %s5867_s15 = smov (!%p525_p10, %s3303_s15), 63 }
  0x1d   : > { %s3304_s14 = sshll.u32 %s5867_s15, 3 }
  0x1e   : > { %s4610_s20 = scalar_lea.vmem %s5793_s9, %s3304_s14 }
  0x1f   : > { %v4614_v0 = vld [vmem:[#allocation7] ss:$0 sm:$0xff]  ;;  %v3890_v2 = vld [vmem:[%s4616_s23 + $0x8] sm:$0xff]   ;;  %v3891_v3 = vld [vmem:[%s4616_s23 + $0x10] sm:$0xff]  }
  0x20   : > { %v3587_v1 = vld [vmem:[%s4616_s23] sm:$0xff]   ;;  %v3592_v6 = vunpack.c.l.bf16 %v3890_v2  ;;  %v3593_v7 = vunpack.c.h.bf16 %v3890_v2  ;;  %v3892_v8 = vld [vmem:[%s4616_s23 + $0x18] sm:$0xff]   ;;  %v3596_v10 = vunpack.c.l.bf16 %v3891_v3  ;;  %v3597_v11 = vunpack.c.h.bf16 %v3891_v3  ;;  %v3894_v27 = vld [vmem:[%s4616_s23 + $0x28] sm:$0xff]  }
  0x21   : > { %v3588_v4 = vunpack.c.l.bf16 %v3587_v1  ;;  %v3589_v5 = vunpack.c.h.bf16 %v3587_v1  ;;  %v4622_v9 = vld [vmem:[#allocation8] ss:$0 sm:$0xff]  ;;  %v3600_v12 = vunpack.c.l.bf16 %v3892_v8  ;;  %v3601_v13 = vunpack.c.h.bf16 %v3892_v8  ;;  %v3895_v32 = vld [vmem:[%s4616_s23 + $0x30] sm:$0xff]   ;;  %v3896_v37 = vld [vmem:[%s4616_s23 + $0x38] sm:$0xff]  }
  0x22   : > { %v615_v16 = vmul.f32 %v3592_v6, %v4614_v0  ;;  %v616_v17 = vmul.f32 %v3593_v7, %v4614_v0  ;;  %v617_v18 = vmul.f32 %v3596_v10, %v4614_v0  ;;  %v618_v19 = vmul.f32 %v3597_v11, %v4614_v0  ;;  %v3893_v22 = vld [vmem:[%s4616_s23 + $0x20] sm:$0xff]   ;;  %v3898_v59 = vld [vmem:[%s4616_s23 + $0x48] sm:$0xff]   ;;  %v3899_v1 = vld [vmem:[%s4616_s23 + $0x50] sm:$0xff]  }
  0x23   : > { %v613_v14 = vmul.f32 %v3588_v4, %v4614_v0  ;;  %v614_v15 = vmul.f32 %v3589_v5, %v4614_v0  ;;  %v619_v20 = vmul.f32 %v3600_v12, %v4614_v0  ;;  %v620_v21 = vmul.f32 %v3601_v13, %v4614_v0  ;;  %v3897_v50 = vld [vmem:[%s4616_s23 + $0x40] sm:$0xff]   ;;  %v3900_v6 = vld [vmem:[%s4616_s23 + $0x58] sm:$0xff]  }
  0x24   : > { %v654_v25 = vadd.f32 %v4622_v9, %v615_v16  ;;  %v655_v26 = vadd.f32 %v4622_v9, %v616_v17  ;;  %v656_v28 = vadd.f32 %v4622_v9, %v617_v18  ;;  %v657_v29 = vadd.f32 %v4622_v9, %v618_v19  ;;  %v3901_v16 = vld [vmem:[%s4616_s23 + $0x60] sm:$0xff]  }
  0x25   : > { %v652_v23 = vadd.f32 %v4622_v9, %v613_v14  ;;  %v653_v24 = vadd.f32 %v4622_v9, %v614_v15  ;;  %v658_v30 = vadd.f32 %v4622_v9, %v619_v20  ;;  %v659_v31 = vadd.f32 %v4622_v9, %v620_v21 }
  0x26   : > { %v3658_v34 = vpack.c.bf16 %v655_v26, %v654_v25  ;;  %v3604_v35 = vunpack.c.l.bf16 %v3893_v22  ;;  %v3605_v36 = vunpack.c.h.bf16 %v3893_v22  ;;  %v3663_v38 = vpack.c.bf16 %v657_v29, %v656_v28  ;;  %v3902_v29 = vld [vmem:[%s4616_s23 + $0x68] sm:$0xff]  }
  0x27   : > { %v3653_v33 = vpack.c.bf16 %v653_v24, %v652_v23  ;;  %v3668_v39 = vpack.c.bf16 %v659_v31, %v658_v30  ;;  %v3608_v40 = vunpack.c.l.bf16 %v3894_v27  ;;  %v3609_v41 = vunpack.c.h.bf16 %v3894_v27 }
  0x28   : > { %3905 = vst [vmem:[#allocation3 + $0x8] sm:$0xff] %v3658_v34   ;;  %v621_v42 = vmul.f32 %v3604_v35, %v4614_v0  ;;  %v622_v43 = vmul.f32 %v3605_v36, %v4614_v0  ;;  %v3612_v44 = vunpack.c.l.bf16 %v3895_v32  ;;  %v3613_v45 = vunpack.c.h.bf16 %v3895_v32  ;;  %3906 = vst [vmem:[#allocation3 + $0x10] sm:$0xff] %v3663_v38   ;;  %v3903_v34 = vld [vmem:[%s4616_s23 + $0x70] sm:$0xff]  }
  0x29   : > { %3654 = vst [vmem:[#allocation3] sm:$0xff] %v3653_v33   ;;  %3907 = vst [vmem:[#allocation3 + $0x18] sm:$0xff] %v3668_v39   ;;  %v623_v46 = vmul.f32 %v3608_v40, %v4614_v0  ;;  %v624_v47 = vmul.f32 %v3609_v41, %v4614_v0  ;;  %v3616_v48 = vunpack.c.l.bf16 %v3896_v37  ;;  %v3617_v49 = vunpack.c.h.bf16 %v3896_v37  ;;  %v3904_v39 = vld [vmem:[%s4616_s23 + $0x78] sm:$0xff]  }
  0x2a   : > { %v660_v51 = vadd.f32 %v4622_v9, %v621_v42  ;;  %v661_v52 = vadd.f32 %v4622_v9, %v622_v43  ;;  %v625_v53 = vmul.f32 %v3612_v44, %v4614_v0  ;;  %v626_v54 = vmul.f32 %v3613_v45, %v4614_v0 }
  0x2b   : > { %v662_v55 = vadd.f32 %v4622_v9, %v623_v46  ;;  %v663_v56 = vadd.f32 %v4622_v9, %v624_v47  ;;  %v627_v57 = vmul.f32 %v3616_v48, %v4614_v0  ;;  %v628_v58 = vmul.f32 %v3617_v49, %v4614_v0 }
  0x2c   : > { %v3673_v60 = vpack.c.bf16 %v661_v52, %v660_v51  ;;  %v664_v61 = vadd.f32 %v4622_v9, %v625_v53  ;;  %v665_v62 = vadd.f32 %v4622_v9, %v626_v54  ;;  %v3620_v63 = vunpack.c.l.bf16 %v3897_v50 }
  0x2d   : > { %v3678_v2 = vpack.c.bf16 %v663_v56, %v662_v55  ;;  %v666_v3 = vadd.f32 %v4622_v9, %v627_v57  ;;  %v667_v4 = vadd.f32 %v4622_v9, %v628_v58  ;;  %v3621_v5 = vunpack.c.h.bf16 %v3897_v50 }
  0x2e   : > { %3908 = vst [vmem:[#allocation3 + $0x20] sm:$0xff] %v3673_v60   ;;  %v3683_v7 = vpack.c.bf16 %v665_v62, %v664_v61  ;;  %v629_v8 = vmul.f32 %v3620_v63, %v4614_v0  ;;  %v3624_v10 = vunpack.c.l.bf16 %v3898_v59  ;;  %v3625_v11 = vunpack.c.h.bf16 %v3898_v59 }
  0x2f   : > { %3909 = vst [vmem:[#allocation3 + $0x28] sm:$0xff] %v3678_v2   ;;  %v3688_v12 = vpack.c.bf16 %v667_v4, %v666_v3  ;;  %v630_v13 = vmul.f32 %v3621_v5, %v4614_v0  ;;  %v3628_v14 = vunpack.c.l.bf16 %v3899_v1  ;;  %v3629_v15 = vunpack.c.h.bf16 %v3899_v1 }
  0x30   : > { %3910 = vst [vmem:[#allocation3 + $0x30] sm:$0xff] %v3683_v7   ;;  %v668_v17 = vadd.f32 %v4622_v9, %v629_v8  ;;  %v631_v18 = vmul.f32 %v3624_v10, %v4614_v0  ;;  %v632_v19 = vmul.f32 %v3625_v11, %v4614_v0  ;;  %v3632_v20 = vunpack.c.l.bf16 %v3900_v6 }
  0x31   : > { %3911 = vst [vmem:[#allocation3 + $0x38] sm:$0xff] %v3688_v12   ;;  %v669_v21 = vadd.f32 %v4622_v9, %v630_v13  ;;  %v633_v22 = vmul.f32 %v3628_v14, %v4614_v0  ;;  %v634_v23 = vmul.f32 %v3629_v15, %v4614_v0  ;;  %v3633_v24 = vunpack.c.h.bf16 %v3900_v6 }
  0x32   : > { %v670_v25 = vadd.f32 %v4622_v9, %v631_v18  ;;  %v671_v26 = vadd.f32 %v4622_v9, %v632_v19  ;;  %v635_v27 = vmul.f32 %v3632_v20, %v4614_v0  ;;  %v3636_v28 = vunpack.c.l.bf16 %v3901_v16 }
  0x33   : > { %v3693_v30 = vpack.c.bf16 %v669_v21, %v668_v17  ;;  %v672_v31 = vadd.f32 %v4622_v9, %v633_v22  ;;  %v673_v32 = vadd.f32 %v4622_v9, %v634_v23  ;;  %v636_v33 = vmul.f32 %v3633_v24, %v4614_v0 }
  0x34   : > { %v3698_v35 = vpack.c.bf16 %v671_v26, %v670_v25  ;;  %v674_v36 = vadd.f32 %v4622_v9, %v635_v27  ;;  %v3637_v37 = vunpack.c.h.bf16 %v3901_v16  ;;  %v637_v38 = vmul.f32 %v3636_v28, %v4614_v0 }
  0x35   : > { %3912 = vst [vmem:[#allocation3 + $0x40] sm:$0xff] %v3693_v30   ;;  %v3703_v40 = vpack.c.bf16 %v673_v32, %v672_v31  ;;  %v675_v41 = vadd.f32 %v4622_v9, %v636_v33  ;;  %v3640_v42 = vunpack.c.l.bf16 %v3902_v29  ;;  %v3641_v43 = vunpack.c.h.bf16 %v3902_v29 }
  0x36   : > { %3913 = vst [vmem:[#allocation3 + $0x48] sm:$0xff] %v3698_v35   ;;  %v638_v44 = vmul.f32 %v3637_v37, %v4614_v0  ;;  %v676_v45 = vadd.f32 %v4622_v9, %v637_v38  ;;  %v3644_v46 = vunpack.c.l.bf16 %v3903_v34  ;;  %v3645_v47 = vunpack.c.h.bf16 %v3903_v34 }
  0x37   : > { %3914 = vst [vmem:[#allocation3 + $0x50] sm:$0xff] %v3703_v40   ;;  %v3708_v48 = vpack.c.bf16 %v675_v41, %v674_v36  ;;  %v639_v49 = vmul.f32 %v3640_v42, %v4614_v0  ;;  %v640_v50 = vmul.f32 %v3641_v43, %v4614_v0  ;;  %v3648_v51 = vunpack.c.l.bf16 %v3904_v39 }
  0x38   : > { %v677_v52 = vadd.f32 %v4622_v9, %v638_v44  ;;  %v641_v53 = vmul.f32 %v3644_v46, %v4614_v0  ;;  %v642_v54 = vmul.f32 %v3645_v47, %v4614_v0  ;;  %v3649_v55 = vunpack.c.h.bf16 %v3904_v39 }
  0x39   : > { %3915 = vst [vmem:[#allocation3 + $0x58] sm:$0xff] %v3708_v48   ;;  %v678_v56 = vadd.f32 %v4622_v9, %v639_v49  ;;  %v679_v57 = vadd.f32 %v4622_v9, %v640_v50  ;;  %v643_v58 = vmul.f32 %v3648_v51, %v4614_v0 }
  0x3a   : > { %v3713_v59 = vpack.c.bf16 %v677_v52, %v676_v45  ;;  %v680_v60 = vadd.f32 %v4622_v9, %v641_v53  ;;  %v681_v61 = vadd.f32 %v4622_v9, %v642_v54  ;;  %v644_v62 = vmul.f32 %v3649_v55, %v4614_v0 }
  0x3b   : > { %v3718_v63 = vpack.c.bf16 %v679_v57, %v678_v56  ;;  %v682_v1 = vadd.f32 %v4622_v9, %v643_v58 }
  0x3c   : > { %3916 = vst [vmem:[#allocation3 + $0x60] sm:$0xff] %v3713_v59   ;;  %v3723_v2 = vpack.c.bf16 %v681_v61, %v680_v60  ;;  %v683_v3 = vadd.f32 %v4622_v9, %v644_v62 }
  0x3d   : > { %3917 = vst [vmem:[#allocation3 + $0x68] sm:$0xff] %v3718_v63  }
  0x3e   : > { %3918 = vst [vmem:[#allocation3 + $0x70] sm:$0xff] %v3723_v2   ;;  %v3728_v4 = vpack.c.bf16 %v683_v3, %v682_v1 }
  0x40   : > { %3919 = vst [vmem:[#allocation3 + $0x78] sm:$0xff] %v3728_v4  }
  0x41 PF: > { %p844_p12 = scmp.eq.s32.totalorder %s4479_s30, 0  ;;  %p845_p13 = scmp.lt.s32.totalorder %s4483_s10, 2 }
  0x43   : > { %p846_p0 = pnand %p845_p13, %p844_p12 }
  0x45   : > { %849 = sbr.rel (%p846_p0) target bundleno = 76 (0x4c), region = 64 }
  0x4a   : > { %v4497_v0 = vmov 0.0  }
  0x4b   : > { %850 = vst [vmem:[#allocation5] sm:$0x1] %v4497_v0  ;;  %851 = vst [vmem:[#allocation6] sm:$0x1] %v4497_v0 }
  0x4c PF: > { %p3342_p1 = scmp.ne.s32.totalorder %s4483_s10, 0 }
  0x4e   : > { %855 = sbr.rel (%p3342_p1) target bundleno = 342 (0x156), region = 68 }
  0x53   : > { %v4255_v9 = vld [vmem:[%s5785_s1 + $0x38] sm:$0xff]   ;;  %v4256_v5 = vld [vmem:[%s5785_s1 + $0x30] sm:$0xff]   ;;  %v4257_v6 = vld [vmem:[%s5785_s1 + $0x28] sm:$0xff]  }
  0x54   : > { %4022 = vmatprep.subr.bf16.mxu0 %v4255_v9  ;;  %4166 = vmatprep.subr.bf16.mxu1 %v4255_v9  ;;  %v4258_v7 = vld [vmem:[%s5785_s1 + $0x20] sm:$0xff]   ;;  %v4259_v11 = vld [vmem:[%s5785_s1 + $0x18] sm:$0xff]   ;;  %v4260_v12 = vld [vmem:[%s5785_s1 + $0x10] sm:$0xff]  }
  0x55   : > { %4023 = vmatpush3.bf16.msra.mxu0 %v4255_v9  ;;  %4174 = vmatpush3.bf16.msra.mxu1 %v4255_v9  ;;  %v4263_v8 = vld [vmem:[%s4604_s29] sm:$0xff]   ;;  %v4261_v13 = vld [vmem:[%s5785_s1 + $0x8] sm:$0xff]   ;;  %v4267_v17 = vld [vmem:[%s4604_s29 + $0x10] sm:$0xff]  }
  0x56   : > { %4024 = vmatprep.subr.bf16.mxu0 %v4256_v5  ;;  %4167 = vmatprep.subr.bf16.mxu1 %v4256_v5  ;;  %v4264_v10 = vld [vmem:[%s4604_s29 + $0x40] sm:$0xff]   ;;  %v4265_v15 = vld [vmem:[%s4604_s29 + $0x8] sm:$0xff]   ;;  %v4268_v18 = vld [vmem:[%s4604_s29 + $0x50] sm:$0xff]  }
  0x57   : > { %4038 = vmatprep.mubr.bf16.mxu0 %v4263_v8  ;;  %4054 = vmatprep.mubr.bf16.mxu1 %v4264_v10  ;;  %v4262_v14 = vld [vmem:[%s5785_s1] sm:$0xff]   ;;  %v4266_v16 = vld [vmem:[%s4604_s29 + $0x48] sm:$0xff]   ;;  %v4269_v19 = vld [vmem:[%s4604_s29 + $0x18] sm:$0xff]  }
  0x58   : > { %v4270_v20 = vld [vmem:[%s4604_s29 + $0x58] sm:$0xff]   ;;  %v4271_v21 = vld [vmem:[%s4604_s29 + $0x20] sm:$0xff]   ;;  %v4273_v23 = vld [vmem:[%s4604_s29 + $0x28] sm:$0xff]  }
  0x59   : > { %4025 = vmatpush3.bf16.msra.mxu0 %v4256_v5  ;;  %4175 = vmatpush3.bf16.msra.mxu1 %v4256_v5  ;;  %v4272_v22 = vld [vmem:[%s4604_s29 + $0x60] sm:$0xff]   ;;  %v4274_v24 = vld [vmem:[%s4604_s29 + $0x68] sm:$0xff]   ;;  %v4275_v25 = vld [vmem:[%s4604_s29 + $0x30] sm:$0xff]  }
  0x5a   : > { %4026 = vmatprep.subr.bf16.mxu0 %v4257_v6  ;;  %4168 = vmatprep.subr.bf16.mxu1 %v4257_v6  ;;  %v4276_v26 = vld [vmem:[%s4604_s29 + $0x70] sm:$0xff]   ;;  %v4277_v27 = vld [vmem:[%s4604_s29 + $0x38] sm:$0xff]   ;;  %v4748_v29 = vld [vmem:[%s5786_s2] ss:$0 sm:$0xff] }
  0x5b   : > { %v4278_v28 = vld [vmem:[%s4604_s29 + $0x78] sm:$0xff]  }
  0x5d   : > { %4027 = vmatpush3.bf16.msra.mxu0 %v4257_v6  ;;  %4176 = vmatpush3.bf16.msra.mxu1 %v4257_v6 }
  0x5e   : > { %4028 = vmatprep.subr.bf16.mxu0 %v4258_v7  ;;  %4169 = vmatprep.subr.bf16.mxu1 %v4258_v7 }
  0x61   : > { %4029 = vmatpush3.bf16.msra.mxu0 %v4258_v7  ;;  %4177 = vmatpush3.bf16.msra.mxu1 %v4258_v7 }
  0x62   : > { %4030 = vmatprep.subr.bf16.mxu0 %v4259_v11  ;;  %4170 = vmatprep.subr.bf16.mxu1 %v4259_v11 }
  0x65   : > { %4031 = vmatpush3.bf16.msra.mxu0 %v4259_v11  ;;  %4178 = vmatpush3.bf16.msra.mxu1 %v4259_v11 }
  0x66   : > { %4032 = vmatprep.subr.bf16.mxu0 %v4260_v12  ;;  %4171 = vmatprep.subr.bf16.mxu1 %v4260_v12 }
  0x69   : > { %4033 = vmatpush3.bf16.msra.mxu0 %v4260_v12  ;;  %4179 = vmatpush3.bf16.msra.mxu1 %v4260_v12 }
  0x6a   : > { %4034 = vmatprep.subr.bf16.mxu0 %v4261_v13  ;;  %4172 = vmatprep.subr.bf16.mxu1 %v4261_v13 }
  0x6d   : > { %4035 = vmatpush3.bf16.msra.mxu0 %v4261_v13  ;;  %4180 = vmatpush3.bf16.msra.mxu1 %v4261_v13 }
  0x6e   : > { %4036 = vmatprep.subr.bf16.mxu0 %v4262_v14  ;;  %4173 = vmatprep.subr.bf16.mxu1 %v4262_v14 }
  0x71   : > { %4037 = vmatpush3.bf16.msra.mxu0 %v4262_v14  ;;  %4181 = vmatpush3.bf16.msra.mxu1 %v4262_v14 }
  0x74   : > { %4039 = vmatmul.mubr.bf16.vlgmr.msra.gmra.mxu0 %v4265_v15  ;;  %4055 = vmatmul.mubr.bf16.vlgmr.msra.gmra.mxu1 %v4266_v16 }
  0x75   : > { %4042 = vmatprep.mubr.bf16.mxu0 %v4267_v17  ;;  %4058 = vmatprep.mubr.bf16.mxu1 %v4268_v18 }
  0x7c   : > { %4043 = vmatmul.mubr.bf16.gmra.mxu0 %v4269_v19  ;;  %4059 = vmatmul.mubr.bf16.gmra.mxu1 %v4270_v20 }
  0x7d   : > { %4046 = vmatprep.mubr.bf16.mxu0 %v4271_v21  ;;  %4062 = vmatprep.mubr.bf16.mxu1 %v4272_v22 }
  0x84   : > { %4047 = vmatmul.mubr.bf16.gmra.mxu0 %v4273_v23  ;;  %4063 = vmatmul.mubr.bf16.gmra.mxu1 %v4274_v24 }
  0x85   : > { %4050 = vmatprep.mubr.bf16.mxu0 %v4275_v25  ;;  %4066 = vmatprep.mubr.bf16.mxu1 %v4276_v26 }
  0x8c   : > { %4051 = vmatmul.mubr.bf16.gmra.mxu0 %v4277_v27  ;;  %4067 = vmatmul.mubr.bf16.gmra.mxu1 %v4278_v28 }
 0x134   : > { %v4040_v30 = vpop.f32.mrf.mxu0  ;;  %v4056_v31 = vpop.f32.mrf.mxu1 }
 0x135   : > { %v1098_v32 = vadd.f32 %v4040_v30, %v4748_v29  ;;  %v1162_v33 = vadd.f32 %v4056_v31, %v4748_v29 }
 0x136   : > { %v1089_v34 = vpop.f32.mrf.mxu0  ;;  %v1153_v35 = vpop.f32.mrf.mxu1 }
 0x137   : > { %1218 = vst [vmem:[#allocation4 + $0xd8] sm:$0xff] %v1098_v32  ;;  %1234 = vst [vmem:[#allocation4 + $0x40] sm:$0xff] %v1162_v33  ;;  %v1090_v36 = vadd.f32 %v4748_v29, %v1089_v34  ;;  %v1154_v37 = vadd.f32 %v4748_v29, %v1153_v35 }
 0x138   : > { %v4041_v38 = vpop.f32.mrf.mxu0  ;;  %v4057_v39 = vpop.f32.mrf.mxu1 }
 0x139   : > { %1216 = vst [vmem:[#allocation4 + $0xb0] sm:$0xff] %v1090_v36  ;;  %1232 = vst [vmem:[#allocation4 + $0x38] sm:$0xff] %v1154_v37  ;;  %v1101_v40 = vadd.f32 %v4041_v38, %v4748_v29  ;;  %v1165_v41 = vadd.f32 %v4057_v39, %v4748_v29 }
 0x13a   : > { %v1092_v42 = vpop.f32.mrf.mxu0  ;;  %v1156_v43 = vpop.f32.mrf.mxu1 }
 0x13b   : > { %1219 = vst [vmem:[#allocation4 + $0x18] sm:$0xff] %v1101_v40  ;;  %1235 = vst [vmem:[#allocation4 + $0xc8] sm:$0xff] %v1165_v41  ;;  %v1093_v44 = vadd.f32 %v4748_v29, %v1092_v42  ;;  %v1157_v45 = vadd.f32 %v4748_v29, %v1156_v43 }
 0x13c   : > { %v4044_v46 = vpop.f32.mrf.mxu0  ;;  %v4060_v47 = vpop.f32.mrf.mxu1 }
 0x13d   : > { %1217 = vst [vmem:[#allocation4] sm:$0xff] %v1093_v44  ;;  %1233 = vst [vmem:[#allocation4 + $0x58] sm:$0xff] %v1157_v45  ;;  %v1114_v48 = vadd.f32 %v4044_v46, %v4748_v29  ;;  %v1178_v49 = vadd.f32 %v4060_v47, %v4748_v29 }
 0x13e   : > { %v1105_v50 = vpop.f32.mrf.mxu0  ;;  %v1169_v51 = vpop.f32.mrf.mxu1 }
 0x13f   : > { %1222 = vst [vmem:[#allocation4 + $0x30] sm:$0xff] %v1114_v48  ;;  %1238 = vst [vmem:[#allocation4 + $0x70] sm:$0xff] %v1178_v49  ;;  %v1106_v52 = vadd.f32 %v4748_v29, %v1105_v50  ;;  %v1170_v53 = vadd.f32 %v4748_v29, %v1169_v51 }
 0x140   : > { %v4045_v54 = vpop.f32.mrf.mxu0  ;;  %v4061_v55 = vpop.f32.mrf.mxu1 }
 0x141   : > { %1220 = vst [vmem:[#allocation4 + $0x50] sm:$0xff] %v1106_v52  ;;  %1236 = vst [vmem:[#allocation4 + $0xe0] sm:$0xff] %v1170_v53  ;;  %v1117_v56 = vadd.f32 %v4045_v54, %v4748_v29  ;;  %v1181_v57 = vadd.f32 %v4061_v55, %v4748_v29 }
 0x142   : > { %v1108_v58 = vpop.f32.mrf.mxu0  ;;  %v1172_v59 = vpop.f32.mrf.mxu1 }
 0x143   : > { %1223 = vst [vmem:[#allocation4 + $0x48] sm:$0xff] %v1117_v56  ;;  %1239 = vst [vmem:[#allocation4 + $0xc0] sm:$0xff] %v1181_v57  ;;  %v1109_v60 = vadd.f32 %v4748_v29, %v1108_v58  ;;  %v1173_v61 = vadd.f32 %v4748_v29, %v1172_v59 }
 0x144   : > { %v4048_v62 = vpop.f32.mrf.mxu0  ;;  %v4064_v63 = vpop.f32.mrf.mxu1 }
 0x145   : > { %1221 = vst [vmem:[#allocation4 + $0x68] sm:$0xff] %v1109_v60  ;;  %1237 = vst [vmem:[#allocation4 + $0x90] sm:$0xff] %v1173_v61  ;;  %v1130_v1 = vadd.f32 %v4048_v62, %v4748_v29  ;;  %v1194_v2 = vadd.f32 %v4064_v63, %v4748_v29 }
 0x146   : > { %v1121_v3 = vpop.f32.mrf.mxu0  ;;  %v1185_v4 = vpop.f32.mrf.mxu1 }
 0x147   : > { %1226 = vst [vmem:[#allocation4 + $0xe8] sm:$0xff] %v1130_v1  ;;  %1242 = vst [vmem:[#allocation4 + $0x10] sm:$0xff] %v1194_v2  ;;  %v1122_v0 = vadd.f32 %v4748_v29, %v1121_v3  ;;  %v1186_v9 = vadd.f32 %v4748_v29, %v1185_v4 }
 0x148   : > { %v4049_v5 = vpop.f32.mrf.mxu0  ;;  %v4065_v6 = vpop.f32.mrf.mxu1 }
 0x149   : > { %1224 = vst [vmem:[#allocation4 + $0x80] sm:$0xff] %v1122_v0  ;;  %1240 = vst [vmem:[#allocation4 + $0xa8] sm:$0xff] %v1186_v9  ;;  %v1133_v7 = vadd.f32 %v4049_v5, %v4748_v29  ;;  %v1197_v8 = vadd.f32 %v4065_v6, %v4748_v29 }
 0x14a   : > { %v1124_v10 = vpop.f32.mrf.mxu0  ;;  %v1188_v11 = vpop.f32.mrf.mxu1 }
 0x14b   : > { %1227 = vst [vmem:[#allocation4 + $0xb8] sm:$0xff] %v1133_v7  ;;  %1243 = vst [vmem:[#allocation4 + $0x28] sm:$0xff] %v1197_v8  ;;  %v1125_v12 = vadd.f32 %v4748_v29, %v1124_v10  ;;  %v1189_v13 = vadd.f32 %v4748_v29, %v1188_v11 }
 0x14c   : > { %v4052_v14 = vpop.f32.mrf.mxu0  ;;  %v4068_v15 = vpop.f32.mrf.mxu1 }
 0x14d   : > { %1225 = vst [vmem:[#allocation4 + $0x88] sm:$0xff] %v1125_v12  ;;  %1241 = vst [vmem:[#allocation4 + $0xd0] sm:$0xff] %v1189_v13  ;;  %v1146_v16 = vadd.f32 %v4052_v14, %v4748_v29  ;;  %v1210_v17 = vadd.f32 %v4068_v15, %v4748_v29 }
 0x14e   : > { %v1137_v18 = vpop.f32.mrf.mxu0  ;;  %v1201_v19 = vpop.f32.mrf.mxu1 }
 0x14f   : > { %1230 = vst [vmem:[#allocation4 + $0x8] sm:$0xff] %v1146_v16  ;;  %1246 = vst [vmem:[#allocation4 + $0x20] sm:$0xff] %v1210_v17  ;;  %v1138_v20 = vadd.f32 %v4748_v29, %v1137_v18  ;;  %v1202_v21 = vadd.f32 %v4748_v29, %v1201_v19 }
 0x150   : > { %v4053_v22 = vpop.f32.mrf.mxu0  ;;  %v4069_v23 = vpop.f32.mrf.mxu1 }
 0x151   : > { %1228 = vst [vmem:[#allocation4 + $0x60] sm:$0xff] %v1138_v20  ;;  %1244 = vst [vmem:[#allocation4 + $0xa0] sm:$0xff] %v1202_v21  ;;  %v1149_v24 = vadd.f32 %v4053_v22, %v4748_v29  ;;  %v1213_v25 = vadd.f32 %v4069_v23, %v4748_v29 }
 0x152   : > { %v1140_v26 = vpop.f32.mrf.mxu0  ;;  %v1204_v27 = vpop.f32.mrf.mxu1 }
 0x153   : > { %1231 = vst [vmem:[#allocation4 + $0x78] sm:$0xff] %v1149_v24  ;;  %1247 = vst [vmem:[#allocation4 + $0x98] sm:$0xff] %v1213_v25  ;;  %v1141_v28 = vadd.f32 %v4748_v29, %v1140_v26  ;;  %v1205_v30 = vadd.f32 %v4748_v29, %v1204_v27 }
 0x155   : > { %1229 = vst [vmem:[#allocation4 + $0xf0] sm:$0xff] %v1141_v28  ;;  %1245 = vst [vmem:[#allocation4 + $0xf8] sm:$0xff] %v1205_v30 }
 0x156 PF: > { %p1248_p2 = pnand %p845_p13, %p534_p7 }
 0x158   : > { %1251 = sbr.rel (%p1248_p2) target bundleno = 608 (0x260), region = 72 }
 0x15d   : > { %v4279_v31 = vld [vmem:[%s5787_s3 + $0x38] sm:$0xff]   ;;  %v4280_v32 = vld [vmem:[%s5787_s3 + $0x30] sm:$0xff]   ;;  %v4281_v29 = vld [vmem:[%s5787_s3 + $0x28] sm:$0xff]  }
 0x15e   : > { %4070 = vmatprep.subr.bf16.mxu0 %v4279_v31  ;;  %4182 = vmatprep.subr.bf16.mxu1 %v4279_v31  ;;  %v4282_v33 = vld [vmem:[%s5787_s3 + $0x20] sm:$0xff]   ;;  %v4283_v36 = vld [vmem:[%s5787_s3 + $0x18] sm:$0xff]   ;;  %v4284_v37 = vld [vmem:[%s5787_s3 + $0x10] sm:$0xff]  }
 0x15f   : > { %4071 = vmatpush3.bf16.msra.mxu0 %v4279_v31  ;;  %4190 = vmatpush3.bf16.msra.mxu1 %v4279_v31  ;;  %v4287_v34 = vld [vmem:[#allocation3] sm:$0xff]   ;;  %v4285_v38 = vld [vmem:[%s5787_s3 + $0x8] sm:$0xff]   ;;  %v4291_v42 = vld [vmem:[#allocation3 + $0x10] sm:$0xff]  }
 0x160   : > { %4072 = vmatprep.subr.bf16.mxu0 %v4280_v32  ;;  %4183 = vmatprep.subr.bf16.mxu1 %v4280_v32  ;;  %v4288_v35 = vld [vmem:[#allocation3 + $0x40] sm:$0xff]   ;;  %v4289_v40 = vld [vmem:[#allocation3 + $0x8] sm:$0xff]   ;;  %v4292_v43 = vld [vmem:[#allocation3 + $0x50] sm:$0xff]  }
 0x161   : > { %4086 = vmatprep.mubr.bf16.mxu0 %v4287_v34  ;;  %4102 = vmatprep.mubr.bf16.mxu1 %v4288_v35  ;;  %v4286_v39 = vld [vmem:[%s5787_s3] sm:$0xff]   ;;  %v4290_v41 = vld [vmem:[#allocation3 + $0x48] sm:$0xff]   ;;  %v4293_v44 = vld [vmem:[#allocation3 + $0x18] sm:$0xff]  }
 0x162   : > { %v4294_v45 = vld [vmem:[#allocation3 + $0x58] sm:$0xff]   ;;  %v4295_v46 = vld [vmem:[#allocation3 + $0x20] sm:$0xff]   ;;  %v4297_v48 = vld [vmem:[#allocation3 + $0x28] sm:$0xff]  }
 0x163   : > { %4073 = vmatpush3.bf16.msra.mxu0 %v4280_v32  ;;  %4191 = vmatpush3.bf16.msra.mxu1 %v4280_v32  ;;  %v4296_v47 = vld [vmem:[#allocation3 + $0x60] sm:$0xff]   ;;  %v4298_v49 = vld [vmem:[#allocation3 + $0x68] sm:$0xff]   ;;  %v4299_v50 = vld [vmem:[#allocation3 + $0x30] sm:$0xff]  }
 0x164   : > { %4074 = vmatprep.subr.bf16.mxu0 %v4281_v29  ;;  %4184 = vmatprep.subr.bf16.mxu1 %v4281_v29  ;;  %v4300_v51 = vld [vmem:[#allocation3 + $0x70] sm:$0xff]   ;;  %v4301_v52 = vld [vmem:[#allocation3 + $0x38] sm:$0xff]   ;;  %v4813_v54 = vld [vmem:[%s5788_s4] ss:$0 sm:$0xff] }
 0x165   : > { %v4302_v53 = vld [vmem:[#allocation3 + $0x78] sm:$0xff]  }
 0x167   : > { %4075 = vmatpush3.bf16.msra.mxu0 %v4281_v29  ;;  %4192 = vmatpush3.bf16.msra.mxu1 %v4281_v29 }
 0x168   : > { %4076 = vmatprep.subr.bf16.mxu0 %v4282_v33  ;;  %4185 = vmatprep.subr.bf16.mxu1 %v4282_v33 }
 0x16b   : > { %4077 = vmatpush3.bf16.msra.mxu0 %v4282_v33  ;;  %4193 = vmatpush3.bf16.msra.mxu1 %v4282_v33 }
 0x16c   : > { %4078 = vmatprep.subr.bf16.mxu0 %v4283_v36  ;;  %4186 = vmatprep.subr.bf16.mxu1 %v4283_v36 }
 0x16f   : > { %4079 = vmatpush3.bf16.msra.mxu0 %v4283_v36  ;;  %4194 = vmatpush3.bf16.msra.mxu1 %v4283_v36 }
 0x170   : > { %4080 = vmatprep.subr.bf16.mxu0 %v4284_v37  ;;  %4187 = vmatprep.subr.bf16.mxu1 %v4284_v37 }
 0x173   : > { %4081 = vmatpush3.bf16.msra.mxu0 %v4284_v37  ;;  %4195 = vmatpush3.bf16.msra.mxu1 %v4284_v37 }
 0x174   : > { %4082 = vmatprep.subr.bf16.mxu0 %v4285_v38  ;;  %4188 = vmatprep.subr.bf16.mxu1 %v4285_v38 }
 0x177   : > { %4083 = vmatpush3.bf16.msra.mxu0 %v4285_v38  ;;  %4196 = vmatpush3.bf16.msra.mxu1 %v4285_v38 }
 0x178   : > { %4084 = vmatprep.subr.bf16.mxu0 %v4286_v39  ;;  %4189 = vmatprep.subr.bf16.mxu1 %v4286_v39 }
 0x17b   : > { %4085 = vmatpush3.bf16.msra.mxu0 %v4286_v39  ;;  %4197 = vmatpush3.bf16.msra.mxu1 %v4286_v39 }
 0x17e   : > { %4087 = vmatmul.mubr.bf16.vlgmr.msra.gmra.mxu0 %v4289_v40  ;;  %4103 = vmatmul.mubr.bf16.vlgmr.msra.gmra.mxu1 %v4290_v41 }
 0x17f   : > { %4090 = vmatprep.mubr.bf16.mxu0 %v4291_v42  ;;  %4106 = vmatprep.mubr.bf16.mxu1 %v4292_v43 }
 0x186   : > { %4091 = vmatmul.mubr.bf16.gmra.mxu0 %v4293_v44  ;;  %4107 = vmatmul.mubr.bf16.gmra.mxu1 %v4294_v45 }
 0x187   : > { %4094 = vmatprep.mubr.bf16.mxu0 %v4295_v46  ;;  %4110 = vmatprep.mubr.bf16.mxu1 %v4296_v47 }
 0x18e   : > { %4095 = vmatmul.mubr.bf16.gmra.mxu0 %v4297_v48  ;;  %4111 = vmatmul.mubr.bf16.gmra.mxu1 %v4298_v49 }
 0x18f   : > { %4098 = vmatprep.mubr.bf16.mxu0 %v4299_v50  ;;  %4114 = vmatprep.mubr.bf16.mxu1 %v4300_v51 }
 0x196   : > { %4099 = vmatmul.mubr.bf16.gmra.mxu0 %v4301_v52  ;;  %4115 = vmatmul.mubr.bf16.gmra.mxu1 %v4302_v53 }
 0x23e   : > { %v4088_v55 = vpop.f32.mrf.mxu0  ;;  %v4104_v56 = vpop.f32.mrf.mxu1 }
 0x23f   : > { %v1494_v57 = vadd.f32 %v4088_v55, %v4813_v54  ;;  %v1558_v58 = vadd.f32 %v4104_v56, %v4813_v54 }
 0x240   : > { %v1485_v59 = vpop.f32.mrf.mxu0  ;;  %v1549_v60 = vpop.f32.mrf.mxu1 }
 0x241   : > { %1614 = vst [vmem:[#allocation4 + $0xd8] sm:$0xff] %v1494_v57  ;;  %1630 = vst [vmem:[#allocation4 + $0x40] sm:$0xff] %v1558_v58  ;;  %v1486_v61 = vadd.f32 %v4813_v54, %v1485_v59  ;;  %v1550_v62 = vadd.f32 %v4813_v54, %v1549_v60 }
 0x242   : > { %v4089_v63 = vpop.f32.mrf.mxu0  ;;  %v4105_v1 = vpop.f32.mrf.mxu1 }
 0x243   : > { %1612 = vst [vmem:[#allocation4 + $0xb0] sm:$0xff] %v1486_v61  ;;  %1628 = vst [vmem:[#allocation4 + $0x38] sm:$0xff] %v1550_v62  ;;  %v1497_v2 = vadd.f32 %v4089_v63, %v4813_v54  ;;  %v1561_v3 = vadd.f32 %v4105_v1, %v4813_v54 }
 0x244   : > { %v1488_v4 = vpop.f32.mrf.mxu0  ;;  %v1552_v0 = vpop.f32.mrf.mxu1 }
 0x245   : > { %1615 = vst [vmem:[#allocation4 + $0x18] sm:$0xff] %v1497_v2  ;;  %1631 = vst [vmem:[#allocation4 + $0xc8] sm:$0xff] %v1561_v3  ;;  %v1489_v9 = vadd.f32 %v4813_v54, %v1488_v4  ;;  %v1553_v5 = vadd.f32 %v4813_v54, %v1552_v0 }
 0x246   : > { %v4092_v6 = vpop.f32.mrf.mxu0  ;;  %v4108_v7 = vpop.f32.mrf.mxu1 }
 0x247   : > { %1613 = vst [vmem:[#allocation4] sm:$0xff] %v1489_v9  ;;  %1629 = vst [vmem:[#allocation4 + $0x58] sm:$0xff] %v1553_v5  ;;  %v1510_v8 = vadd.f32 %v4092_v6, %v4813_v54  ;;  %v1574_v10 = vadd.f32 %v4108_v7, %v4813_v54 }
 0x248   : > { %v1501_v11 = vpop.f32.mrf.mxu0  ;;  %v1565_v12 = vpop.f32.mrf.mxu1 }
 0x249   : > { %1618 = vst [vmem:[#allocation4 + $0x30] sm:$0xff] %v1510_v8  ;;  %1634 = vst [vmem:[#allocation4 + $0x70] sm:$0xff] %v1574_v10  ;;  %v1502_v13 = vadd.f32 %v4813_v54, %v1501_v11  ;;  %v1566_v14 = vadd.f32 %v4813_v54, %v1565_v12 }
 0x24a   : > { %v4093_v15 = vpop.f32.mrf.mxu0  ;;  %v4109_v16 = vpop.f32.mrf.mxu1 }
 0x24b   : > { %1616 = vst [vmem:[#allocation4 + $0x50] sm:$0xff] %v1502_v13  ;;  %1632 = vst [vmem:[#allocation4 + $0xe0] sm:$0xff] %v1566_v14  ;;  %v1513_v17 = vadd.f32 %v4093_v15, %v4813_v54  ;;  %v1577_v18 = vadd.f32 %v4109_v16, %v4813_v54 }
 0x24c   : > { %v1504_v19 = vpop.f32.mrf.mxu0  ;;  %v1568_v20 = vpop.f32.mrf.mxu1 }
 0x24d   : > { %1619 = vst [vmem:[#allocation4 + $0x48] sm:$0xff] %v1513_v17  ;;  %1635 = vst [vmem:[#allocation4 + $0xc0] sm:$0xff] %v1577_v18  ;;  %v1505_v21 = vadd.f32 %v4813_v54, %v1504_v19  ;;  %v1569_v22 = vadd.f32 %v4813_v54, %v1568_v20 }
 0x24e   : > { %v4096_v23 = vpop.f32.mrf.mxu0  ;;  %v4112_v24 = vpop.f32.mrf.mxu1 }
 0x24f   : > { %1617 = vst [vmem:[#allocation4 + $0x68] sm:$0xff] %v1505_v21  ;;  %1633 = vst [vmem:[#allocation4 + $0x90] sm:$0xff] %v1569_v22  ;;  %v1526_v25 = vadd.f32 %v4096_v23, %v4813_v54  ;;  %v1590_v26 = vadd.f32 %v4112_v24, %v4813_v54 }
 0x250   : > { %v1517_v27 = vpop.f32.mrf.mxu0  ;;  %v1581_v28 = vpop.f32.mrf.mxu1 }
 0x251   : > { %1622 = vst [vmem:[#allocation4 + $0xe8] sm:$0xff] %v1526_v25  ;;  %1638 = vst [vmem:[#allocation4 + $0x10] sm:$0xff] %v1590_v26  ;;  %v1518_v30 = vadd.f32 %v4813_v54, %v1517_v27  ;;  %v1582_v31 = vadd.f32 %v4813_v54, %v1581_v28 }
 0x252   : > { %v4097_v32 = vpop.f32.mrf.mxu0  ;;  %v4113_v29 = vpop.f32.mrf.mxu1 }
 0x253   : > { %1620 = vst [vmem:[#allocation4 + $0x80] sm:$0xff] %v1518_v30  ;;  %1636 = vst [vmem:[#allocation4 + $0xa8] sm:$0xff] %v1582_v31  ;;  %v1529_v33 = vadd.f32 %v4097_v32, %v4813_v54  ;;  %v1593_v34 = vadd.f32 %v4113_v29, %v4813_v54 }
 0x254   : > { %v1520_v35 = vpop.f32.mrf.mxu0  ;;  %v1584_v36 = vpop.f32.mrf.mxu1 }
 0x255   : > { %1623 = vst [vmem:[#allocation4 + $0xb8] sm:$0xff] %v1529_v33  ;;  %1639 = vst [vmem:[#allocation4 + $0x28] sm:$0xff] %v1593_v34  ;;  %v1521_v37 = vadd.f32 %v4813_v54, %v1520_v35  ;;  %v1585_v38 = vadd.f32 %v4813_v54, %v1584_v36 }
 0x256   : > { %v4100_v39 = vpop.f32.mrf.mxu0  ;;  %v4116_v40 = vpop.f32.mrf.mxu1 }
 0x257   : > { %1621 = vst [vmem:[#allocation4 + $0x88] sm:$0xff] %v1521_v37  ;;  %1637 = vst [vmem:[#allocation4 + $0xd0] sm:$0xff] %v1585_v38  ;;  %v1542_v41 = vadd.f32 %v4100_v39, %v4813_v54  ;;  %v1606_v42 = vadd.f32 %v4116_v40, %v4813_v54 }
 0x258   : > { %v1533_v43 = vpop.f32.mrf.mxu0  ;;  %v1597_v44 = vpop.f32.mrf.mxu1 }
 0x259   : > { %1626 = vst [vmem:[#allocation4 + $0x8] sm:$0xff] %v1542_v41  ;;  %1642 = vst [vmem:[#allocation4 + $0x20] sm:$0xff] %v1606_v42  ;;  %v1534_v45 = vadd.f32 %v4813_v54, %v1533_v43  ;;  %v1598_v46 = vadd.f32 %v4813_v54, %v1597_v44 }
 0x25a   : > { %v4101_v47 = vpop.f32.mrf.mxu0  ;;  %v4117_v48 = vpop.f32.mrf.mxu1 }
 0x25b   : > { %1624 = vst [vmem:[#allocation4 + $0x60] sm:$0xff] %v1534_v45  ;;  %1640 = vst [vmem:[#allocation4 + $0xa0] sm:$0xff] %v1598_v46  ;;  %v1545_v49 = vadd.f32 %v4101_v47, %v4813_v54  ;;  %v1609_v50 = vadd.f32 %v4117_v48, %v4813_v54 }
 0x25c   : > { %v1536_v51 = vpop.f32.mrf.mxu0  ;;  %v1600_v52 = vpop.f32.mrf.mxu1 }
 0x25d   : > { %1627 = vst [vmem:[#allocation4 + $0x78] sm:$0xff] %v1545_v49  ;;  %1643 = vst [vmem:[#allocation4 + $0x98] sm:$0xff] %v1609_v50  ;;  %v1537_v53 = vadd.f32 %v4813_v54, %v1536_v51  ;;  %v1601_v55 = vadd.f32 %v4813_v54, %v1600_v52 }
 0x25f   : > { %1625 = vst [vmem:[#allocation4 + $0xf0] sm:$0xff] %v1537_v53  ;;  %1641 = vst [vmem:[#allocation4 + $0xf8] sm:$0xff] %v1601_v55 }
 0x260 PF: > { %p3393_p3 = scmp.ge.s32.totalorder %s4483_s10, 2 }
 0x262   : > { %1646 = sbr.rel (%p3393_p3) target bundleno = 875 (0x36b), region = 76 }
 0x267   : > { %v1647_v56 = vld [vmem:[#allocation4 + $0xb0] sm:$0xff]  ;;  %v1648_v57 = vld [vmem:[#allocation4] sm:$0xff]  ;;  %v1649_v58 = vld [vmem:[#allocation4 + $0xd8] sm:$0xff]  ;;  %p3394_p4 = scmp.ge.s32.totalorder %s4479_s30, 1 }
 0x268   : > { %v1650_v59 = vld [vmem:[#allocation4 + $0x18] sm:$0xff]  ;;  %v1651_v60 = vld [vmem:[#allocation4 + $0x50] sm:$0xff]  ;;  %v1652_v61 = vld [vmem:[#allocation4 + $0x68] sm:$0xff]  ;;  %v4848_v62 = vmax.f32 %v1647_v56, 0.0  ;;  %v4850_v63 = vmax.f32 %v1648_v57, 0.0  ;;  %v4852_v1 = vmax.f32 %v1649_v58, 0.0 }
 0x269   : > { %v1653_v2 = vld [vmem:[#allocation4 + $0x30] sm:$0xff]  ;;  %v1654_v54 = vld [vmem:[#allocation4 + $0x48] sm:$0xff]  ;;  %v1655_v3 = vld [vmem:[#allocation4 + $0x80] sm:$0xff]  ;;  %v4854_v4 = vmax.f32 %v1650_v59, 0.0  ;;  %v4856_v0 = vmax.f32 %v1651_v60, 0.0  ;;  %v4858_v9 = vmax.f32 %v1652_v61, 0.0 }
 0x26a   : > { %v1656_v5 = vld [vmem:[#allocation4 + $0x88] sm:$0xff]  ;;  %v1658_v7 = vld [vmem:[#allocation4 + $0xb8] sm:$0xff]  ;;  %v4860_v8 = vmax.f32 %v1653_v2, 0.0  ;;  %v4862_v10 = vmax.f32 %v1654_v54, 0.0  ;;  %v4864_v11 = vmax.f32 %v1655_v3, 0.0  ;;  %v1659_v12 = vld [vmem:[#allocation4 + $0x60] sm:$0xff] }
 0x26b   : > { %v1657_v6 = vld [vmem:[#allocation4 + $0xe8] sm:$0xff]  ;;  %v1660_v13 = vld [vmem:[#allocation4 + $0xf0] sm:$0xff]  ;;  %v4866_v15 = vmax.f32 %v1656_v5, 0.0  ;;  %v4870_v17 = vmax.f32 %v1658_v7, 0.0  ;;  %v1662_v18 = vld [vmem:[#allocation4 + $0x78] sm:$0xff]  ;;  %v4872_v21 = vmax.f32 %v1659_v12, 0.0 }
 0x26c   : > { %v1661_v14 = vld [vmem:[#allocation4 + $0x8] sm:$0xff]  ;;  %v4868_v16 = vmax.f32 %v1657_v6, 0.0  ;;  %v1663_v19 = vld [vmem:[#allocation4 + $0x38] sm:$0xff]  ;;  %v4874_v22 = vmax.f32 %v1660_v13, 0.0  ;;  %v1665_v24 = vld [vmem:[#allocation4 + $0x40] sm:$0xff]  ;;  %v4878_v27 = vmax.f32 %v1662_v18, 0.0 }
 0x26d   : > { %v1664_v20 = vld [vmem:[#allocation4 + $0x58] sm:$0xff]  ;;  %v4876_v23 = vmax.f32 %v1661_v14, 0.0  ;;  %v1666_v25 = vld [vmem:[#allocation4 + $0xc8] sm:$0xff]  ;;  %v1667_v26 = vld [vmem:[#allocation4 + $0xe0] sm:$0xff]  ;;  %v4880_v28 = vmax.f32 %v1663_v19, 0.0  ;;  %v4884_v33 = vmax.f32 %v1665_v24, 0.0 }
 0x26e   : > { %v4882_v30 = vmax.f32 %v1664_v20, 0.0  ;;  %v1668_v31 = vld [vmem:[#allocation4 + $0x90] sm:$0xff]  ;;  %v1670_v29 = vld [vmem:[#allocation4 + $0xc0] sm:$0xff]  ;;  %v4886_v34 = vmax.f32 %v1666_v25, 0.0  ;;  %v4888_v35 = vmax.f32 %v1667_v26, 0.0  ;;  %v1671_v36 = vld [vmem:[#allocation4 + $0xa8] sm:$0xff] }
 0x26f   : > { %v1669_v32 = vld [vmem:[#allocation4 + $0x70] sm:$0xff]  ;;  %v4890_v39 = vmax.f32 %v1668_v31, 0.0  ;;  %v4894_v41 = vmax.f32 %v1670_v29, 0.0  ;;  %v1674_v42 = vld [vmem:[#allocation4 + $0x28] sm:$0xff]  ;;  %v1675_v43 = vld [vmem:[#allocation4 + $0xa0] sm:$0xff]  ;;  %v4896_v45 = vmax.f32 %v1671_v36, 0.0 }
 0x270   : > { %5812 = vst [vmem:[#allocation13_spill] sm:$0xff] %v4888_v35  ;;  %v1672_v37 = vld [vmem:[#allocation4 + $0xd0] sm:$0xff]  ;;  %v4892_v40 = vmax.f32 %v1669_v32, 0.0  ;;  %v1676_v44 = vld [vmem:[#allocation4 + $0xf8] sm:$0xff]  ;;  %v1677_v48 = vld [vmem:[#allocation4 + $0x20] sm:$0xff]  ;;  %v4902_v50 = vmax.f32 %v1674_v42, 0.0 }
 0x271   : > { %v1673_v38 = vld [vmem:[#allocation4 + $0x10] sm:$0xff]  ;;  %5813 = vst [vmem:[#allocation14_spill] sm:$0xff] %v4890_v39  ;;  %5815 = vst [vmem:[#allocation16_spill] sm:$0xff] %v4894_v41  ;;  %v4898_v46 = vmax.f32 %v1672_v37, 0.0  ;;  %v1678_v49 = vld [vmem:[#allocation4 + $0x98] sm:$0xff]  ;;  %v4904_v51 = vmax.f32 %v1675_v43, 0.0 }
 0x272   : > { %5814 = vst [vmem:[#allocation15_spill] sm:$0xff] %v4892_v40  ;;  %5816 = vst [vmem:[#allocation17_spill] sm:$0xff] %v4896_v45  ;;  %v4900_v47 = vmax.f32 %v1673_v38, 0.0  ;;  %v4906_v52 = vmax.f32 %v1676_v44, 0.0  ;;  %v4908_v53 = vmax.f32 %v1677_v48, 0.0  ;;  %v4910_v55 = vmax.f32 %v1678_v49, 0.0 }
 0x273   : > { %5817 = vst [vmem:[#allocation18_spill] sm:$0xff] %v4898_v46  ;;  %5819 = vst [vmem:[#allocation20_spill] sm:$0xff] %v4902_v50  ;;  %1714 = sbr.rel (%p3394_p4) target bundleno = 716 (0x2cc), region = 80  ;;  %s1843_s21 = sshra.s32 (!%p3394_p4), %s4585_s16, 3 }
 0x274   : > { %5818 = vst [vmem:[#allocation19_spill] sm:$0xff] %v4900_v47  ;;  %5820 = vst [vmem:[#allocation21_spill] sm:$0xff] %v4904_v51  ;;  %s3427_s23 = sshll.u32 (!%p3394_p4), %s1843_s21, 2 }
 0x275   : > { %5821 = vst [vmem:[#allocation22_spill] sm:$0xff] %v4906_v52  ;;  %5822 = vst [vmem:[#allocation23_spill] sm:$0xff] %v4908_v53  ;;  %s1846_s11 = scalar_lea.vmem (!%p3394_p4), [#allocation2], %s3427_s23 }
 0x276   : > { %5823 = vst [vmem:[#allocation24_spill] sm:$0xff] %v4910_v55 }
 0x278   : > { %v3733_v56 = vpack.c.bf16 %v4850_v63, %v4848_v62  ;;  %v3738_v57 = vpack.c.bf16 %v4854_v4, %v4852_v1  ;;  %v3743_v58 = vpack.c.bf16 %v4858_v9, %v4856_v0  ;;  %v3748_v59 = vpack.c.bf16 %v4862_v10, %v4860_v8 }
 0x279   : > { %v3753_v60 = vpack.c.bf16 %v4866_v15, %v4864_v11  ;;  %v3758_v61 = vpack.c.bf16 %v4870_v17, %v4868_v16  ;;  %v3763_v2 = vpack.c.bf16 %v4874_v22, %v4872_v21  ;;  %v3768_v54 = vpack.c.bf16 %v4878_v27, %v4876_v23 }
 0x27a   : > { %v3773_v3 = vpack.c.bf16 %v4882_v30, %v4880_v28  ;;  %v3778_v5 = vpack.c.bf16 %v4886_v34, %v4884_v33  ;;  %v3783_v6 = vpack.c.bf16 %v4890_v39, %v4888_v35  ;;  %v3788_v7 = vpack.c.bf16 %v4894_v41, %v4892_v40  ;;  %3734 = vst [vmem:[%s1846_s11] sm:$0xff] %v3733_v56  }
 0x27b   : > { %3920 = vst [vmem:[%s1846_s11 + $0x8] sm:$0xff] %v3738_v57   ;;  %3921 = vst [vmem:[%s1846_s11 + $0x10] sm:$0xff] %v3743_v58   ;;  %v3793_v12 = vpack.c.bf16 %v4898_v46, %v4896_v45  ;;  %v3798_v13 = vpack.c.bf16 %v4902_v50, %v4900_v47  ;;  %v3803_v14 = vpack.c.bf16 %v4906_v52, %v4904_v51 }
 0x27c   : > { %3922 = vst [vmem:[%s1846_s11 + $0x18] sm:$0xff] %v3748_v59   ;;  %3923 = vst [vmem:[%s1846_s11 + $0x20] sm:$0xff] %v3753_v60   ;;  %v3808_v18 = vpack.c.bf16 %v4910_v55, %v4908_v53  ;;  %v1880_v19 = vadd.f32 %v4850_v63, %v4848_v62  ;;  %v1920_v25 = vmul.f32 %v4848_v62, %v4848_v62 }
 0x27d   : > { %3924 = vst [vmem:[%s1846_s11 + $0x28] sm:$0xff] %v3758_v61   ;;  %3925 = vst [vmem:[%s1846_s11 + $0x30] sm:$0xff] %v3763_v2   ;;  %v1921_v26 = vmul.f32 %v4850_v63, %v4850_v63  ;;  %v1922_v32 = vmul.f32 %v4852_v1, %v4852_v1  ;;  %v1923_v36 = vmul.f32 %v4854_v4, %v4854_v4 }
 0x27e   : > { %3926 = vst [vmem:[%s1846_s11 + $0x38] sm:$0xff] %v3768_v54   ;;  %3927 = vst [vmem:[%s1846_s11 + $0x40] sm:$0xff] %v3773_v3   ;;  %v1881_v20 = vadd.f32 %v1880_v19, %v4852_v1  ;;  %v1924_v42 = vmul.f32 %v4856_v0, %v4856_v0  ;;  %v1925_v48 = vmul.f32 %v4858_v9, %v4858_v9 }
 0x27f   : > { %3928 = vst [vmem:[%s1846_s11 + $0x48] sm:$0xff] %v3778_v5   ;;  %3929 = vst [vmem:[%s1846_s11 + $0x50] sm:$0xff] %v3783_v6   ;;  %v1952_v37 = vadd.f32 %v1921_v26, %v1920_v25  ;;  %v1926_v57 = vmul.f32 %v4860_v8, %v4860_v8  ;;  %v1927_v60 = vmul.f32 %v4862_v10, %v4862_v10 }
 0x280   : > { %3930 = vst [vmem:[%s1846_s11 + $0x58] sm:$0xff] %v3788_v7   ;;  %3931 = vst [vmem:[%s1846_s11 + $0x60] sm:$0xff] %v3793_v12   ;;  %v1882_v24 = vadd.f32 %v1881_v20, %v4854_v4  ;;  %v1928_v54 = vmul.f32 %v4864_v11, %v4864_v11  ;;  %v1929_v6 = vmul.f32 %v4866_v15, %v4866_v15 }
 0x281   : > { %3932 = vst [vmem:[%s1846_s11 + $0x68] sm:$0xff] %v3798_v13   ;;  %3933 = vst [vmem:[%s1846_s11 + $0x70] sm:$0xff] %v3803_v14   ;;  %v1953_v43 = vadd.f32 %v1952_v37, %v1922_v32  ;;  %v1930_v13 = vmul.f32 %v4868_v16, %v4868_v16  ;;  %v1931_v19 = vmul.f32 %v4870_v17, %v4870_v17 }
 0x282   : > { %3934 = vst [vmem:[%s1846_s11 + $0x78] sm:$0xff] %v3808_v18   ;;  %v1883_v31 = vadd.f32 %v1882_v24, %v4856_v0  ;;  %v1932_v25 = vmul.f32 %v4872_v21, %v4872_v21  ;;  %v1933_v32 = vmul.f32 %v4874_v22, %v4874_v22  ;;  %v1934_v37 = vmul.f32 %v4876_v23, %v4876_v23 }
 0x283   : > { %v1954_v49 = vadd.f32 %v1953_v43, %v1923_v36  ;;  %v1935_v43 = vmul.f32 %v4878_v27, %v4878_v27 }
 0x284   : > { %v1884_v29 = vadd.f32 %v1883_v31, %v4858_v9 }
 0x285   : > { %v1955_v58 = vadd.f32 %v1954_v49, %v1924_v42  ;;  %v1936_v49 = vmul.f32 %v4880_v28, %v4880_v28 }
 0x286   : > { %v1885_v38 = vadd.f32 %v1884_v29, %v4860_v8 }
 0x287   : > { %v1956_v61 = vadd.f32 %v1955_v58, %v1925_v48  ;;  %v1937_v58 = vmul.f32 %v4882_v30, %v4882_v30 }
 0x288   : > { %v1886_v44 = vadd.f32 %v1885_v38, %v4862_v10 }
 0x289   : > { %v1957_v3 = vadd.f32 %v1956_v61, %v1926_v57  ;;  %v1938_v61 = vmul.f32 %v4884_v33, %v4884_v33 }
 0x28a   : > { %v1887_v56 = vadd.f32 %v1886_v44, %v4864_v11 }
 0x28b   : > { %v1958_v7 = vadd.f32 %v1957_v3, %v1927_v60  ;;  %v1939_v3 = vmul.f32 %v4886_v34, %v4886_v34 }
 0x28c   : > { %v1888_v59 = vadd.f32 %v1887_v56, %v4866_v15 }
 0x28d   : > { %v1959_v14 = vadd.f32 %v1958_v7, %v1928_v54  ;;  %v1940_v7 = vmul.f32 %v4888_v35, %v4888_v35 }
 0x28e   : > { %v1889_v2 = vadd.f32 %v1888_v59, %v4868_v16 }
 0x28f   : > { %v1960_v20 = vadd.f32 %v1959_v14, %v1929_v6  ;;  %v1941_v14 = vmul.f32 %v4890_v39, %v4890_v39 }
 0x290   : > { %v1890_v5 = vadd.f32 %v1889_v2, %v4870_v17 }
 0x291   : > { %v1961_v26 = vadd.f32 %v1960_v20, %v1930_v13  ;;  %v1942_v20 = vmul.f32 %v4892_v40, %v4892_v40 }
 0x292   : > { %v1891_v12 = vadd.f32 %v1890_v5, %v4872_v21 }
 0x293   : > { %v1962_v29 = vadd.f32 %v1961_v26, %v1931_v19  ;;  %v1943_v26 = vmul.f32 %v4894_v41, %v4894_v41 }
 0x294   : > { %v1892_v18 = vadd.f32 %v1891_v12, %v4874_v22 }
 0x295   : > { %v1963_v38 = vadd.f32 %v1962_v29, %v1932_v25  ;;  %v1944_v29 = vmul.f32 %v4896_v45, %v4896_v45 }
 0x296   : > { %v1893_v24 = vadd.f32 %v1892_v18, %v4876_v23 }
 0x297   : > { %v1964_v44 = vadd.f32 %v1963_v38, %v1933_v32  ;;  %v1945_v38 = vmul.f32 %v4898_v46, %v4898_v46 }
 0x298   : > { %v1894_v31 = vadd.f32 %v1893_v24, %v4878_v27 }
 0x299   : > { %v1965_v56 = vadd.f32 %v1964_v44, %v1934_v37  ;;  %v1946_v44 = vmul.f32 %v4900_v47, %v4900_v47 }
 0x29a   : > { %v1895_v36 = vadd.f32 %v1894_v31, %v4880_v28 }
 0x29b   : > { %v1966_v59 = vadd.f32 %v1965_v56, %v1935_v43  ;;  %v1947_v56 = vmul.f32 %v4902_v50, %v4902_v50 }
 0x29c   : > { %v1896_v42 = vadd.f32 %v1895_v36, %v4882_v30 }
 0x29d   : > { %v1967_v2 = vadd.f32 %v1966_v59, %v1936_v49  ;;  %v1948_v59 = vmul.f32 %v4904_v51, %v4904_v51 }
 0x29e   : > { %v1897_v48 = vadd.f32 %v1896_v42, %v4884_v33 }
 0x29f   : > { %v1968_v5 = vadd.f32 %v1967_v2, %v1937_v58  ;;  %v1949_v2 = vmul.f32 %v4906_v52, %v4906_v52 }
 0x2a0   : > { %v1898_v57 = vadd.f32 %v1897_v48, %v4886_v34 }
 0x2a1   : > { %v1969_v12 = vadd.f32 %v1968_v5, %v1938_v61  ;;  %v1950_v5 = vmul.f32 %v4908_v53, %v4908_v53 }
 0x2a2   : > { %v1899_v60 = vadd.f32 %v1898_v57, %v4888_v35 }
 0x2a3   : > { %v1970_v18 = vadd.f32 %v1969_v12, %v1939_v3  ;;  %v1951_v12 = vmul.f32 %v4910_v55, %v4910_v55 }
 0x2a4   : > { %v1900_v54 = vadd.f32 %v1899_v60, %v4890_v39 }
 0x2a5   : > { %v1971_v24 = vadd.f32 %v1970_v18, %v1940_v7 }
 0x2a6   : > { %v1901_v6 = vadd.f32 %v1900_v54, %v4892_v40 }
 0x2a7   : > { %v1972_v31 = vadd.f32 %v1971_v24, %v1941_v14 }
 0x2a8   : > { %v1902_v13 = vadd.f32 %v1901_v6, %v4894_v41 }
 0x2a9   : > { %v1973_v36 = vadd.f32 %v1972_v31, %v1942_v20 }
 0x2aa   : > { %v1903_v19 = vadd.f32 %v1902_v13, %v4896_v45 }
 0x2ab   : > { %v1974_v42 = vadd.f32 %v1973_v36, %v1943_v26 }
 0x2ac   : > { %v1904_v25 = vadd.f32 %v1903_v19, %v4898_v46 }
 0x2ad   : > { %v1975_v48 = vadd.f32 %v1974_v42, %v1944_v29  ;;  %v1919_v42 = vld [vmem:[#allocation6] sm:$0x1] }
 0x2ae   : > { %v1905_v32 = vadd.f32 %v1904_v25, %v4900_v47  ;;  %v1879_v25 = vld [vmem:[#allocation5] sm:$0x1] }
 0x2af   : > { %v1976_v57 = vadd.f32 %v1975_v48, %v1945_v38 }
 0x2b0   : > { %v1906_v37 = vadd.f32 %v1905_v32, %v4902_v50 }
 0x2b1   : > { %v1977_v60 = vadd.f32 %v1976_v57, %v1946_v44 }
 0x2b2   : > { %v1907_v43 = vadd.f32 %v1906_v37, %v4904_v51 }
 0x2b3   : > { %v1978_v54 = vadd.f32 %v1977_v60, %v1947_v56 }
 0x2b4   : > { %v1908_v49 = vadd.f32 %v1907_v43, %v4906_v52 }
 0x2b5   : > { %v1979_v6 = vadd.f32 %v1978_v54, %v1948_v59 }
 0x2b6   : > { %v1909_v58 = vadd.f32 %v1908_v49, %v4908_v53 }
 0x2b7   : > { %v1980_v13 = vadd.f32 %v1979_v6, %v1949_v2 }
 0x2b8   : > { %v1910_v61 = vadd.f32 %v1909_v58, %v4910_v55 }
 0x2b9   : > { %v1981_v18 = vadd.f32 %v1980_v13, %v1950_v5 }
 0x2ba   : > { %v1911_v3 = vrot.slane %v1910_v61, 4 }
 0x2bb   : > { %v1982_v20 = vadd.f32 %v1981_v18, %v1951_v12 }
 0x2bc   : > { %v1912_v7 = vadd.f32 %v1911_v3, %v1910_v61 }
 0x2bd   : > { %v1983_v26 = vrot.slane %v1982_v20, 4 }
 0x2be   : > { %v1913_v14 = vrot.slane %v1912_v7, 2 }
 0x2bf   : > { %v1984_v32 = vadd.f32 %v1983_v26, %v1982_v20 }
 0x2c0   : > { %v1914_v19 = vadd.f32 %v1913_v14, %v1912_v7 }
 0x2c1   : > { %v1985_v36 = vrot.slane %v1984_v32, 2 }
 0x2c2   : > { %v1915_v24 = vrot.slane %v1914_v19, 1 }
 0x2c3   : > { %v1986_v37 = vadd.f32 %v1985_v36, %v1984_v32 }
 0x2c4   : > { %v1916_v31 = vadd.f32 %v1915_v24, %v1914_v19 }
 0x2c5   : > { %v1987_v38 = vrot.slane %v1986_v37, 1 }
 0x2c6   : > { %v1917_v29 = vadd.f32 %v1916_v31, %v1879_v25 }
 0x2c7   : > { %v1988_v43 = vadd.f32 %v1987_v38, %v1986_v37 }
 0x2c8   : > { %1918 = vst [vmem:[#allocation5] sm:$0x1] %v1917_v29 }
 0x2c9   : > { %v1989_v44 = vadd.f32 %v1988_v43, %v1919_v42 }
 0x2cb   : > { %1990 = vst [vmem:[#allocation6] sm:$0x1] %v1989_v44 }
 0x2cc PF: > { %p3428_p5 = scmp.ne.s32.totalorder %s4479_s30, 1 }
 0x2cd   : > { %s2253_s30 = sshra.s32 (!%p3428_p5), %s4585_s16, 3 }
 0x2ce   : > { %1994 = sbr.rel (%p3428_p5) target bundleno = 875 (0x36b), region = 84 }
 0x2d3   : > { %v1995_v48 = vlaneseq  ;;  %v2028_v58 = vstv %s4585_s16  ;;  %s3461_s16 = sshll.u32 %s2253_s30, 2 }
 0x2d4   : > { %s5295_s12 = scalar_lea.vmem [#allocation2], %s3461_s16 }
 0x2d5   : > { %v1996_v49 = vshrl.u32 %v1995_v48, 7 }
 0x2d7   : > { %v1997_v56 = vadd.s32 8, %v1996_v49  ;;  %v1998_v57 = vadd.s32 16, %v1996_v49  ;;  %v1999_v59 = vadd.s32 24, %v1996_v49  ;;  %v2000_v60 = vadd.s32 32, %v1996_v49 }
 0x2d8   : > { %v2001_v61 = vadd.s32 40, %v1996_v49  ;;  %v2002_v2 = vadd.s32 48, %v1996_v49  ;;  %v2003_v54 = vadd.s32 56, %v1996_v49  ;;  %v2004_v3 = vadd.s32 64, %v1996_v49 }
 0x2d9   : > { %v2005_v5 = vadd.s32 72, %v1996_v49  ;;  %v2006_v6 = vadd.s32 80, %v1996_v49  ;;  %v2007_v7 = vadd.s32 88, %v1996_v49  ;;  %v2008_v12 = vadd.s32 96, %v1996_v49 }
 0x2da   : > { %v2009_v13 = vadd.s32 104, %v1996_v49  ;;  %v2010_v14 = vadd.s32 112, %v1996_v49  ;;  %v2011_v18 = vadd.s32 120, %v1996_v49  ;;  %v2012_v19 = vadd.s32 128, %v1996_v49 }
 0x2db   : > { %v2013_v20 = vadd.s32 136, %v1996_v49  ;;  %v2014_v24 = vadd.s32 144, %v1996_v49  ;;  %v2015_v25 = vadd.s32 152, %v1996_v49  ;;  %v2016_v26 = vadd.s32 160, %v1996_v49 }
 0x2dc   : > { %v2017_v31 = vadd.s32 168, %v1996_v49  ;;  %v2018_v32 = vadd.s32 176, %v1996_v49  ;;  %v2019_v29 = vadd.s32 184, %v1996_v49  ;;  %v2020_v36 = vadd.s32 192, %v1996_v49 }
 0x2dd   : > { %v2021_v37 = vadd.s32 200, %v1996_v49  ;;  %v2022_v38 = vadd.s32 208, %v1996_v49  ;;  %v2023_v42 = vadd.s32 216, %v1996_v49  ;;  %v2024_v43 = vadd.s32 224, %v1996_v49 }
 0x2de   : > { %v2025_v44 = vadd.s32 232, %v1996_v49  ;;  %v2026_v48 = vadd.s32 240, %v1996_v49  ;;  %v2027_v55 = vadd.s32 248, %v1996_v49  ;;  %v2029_v53 = vadd.s32 %v2028_v58, %v1996_v49 }
 0x2df   : > { %v2030_v52 = vadd.s32 %v2028_v58, %v1997_v56  ;;  %v5044_v51 = vadd.s32 %v2028_v58, %v1998_v57  ;;  %v5046_v50 = vadd.s32 %v2028_v58, %v1999_v59  ;;  %v5048_v47 = vadd.s32 %v2028_v58, %v2000_v60 }
 0x2e0   : > { %v5050_v46 = vadd.s32 %v2028_v58, %v2001_v61  ;;  %v5052_v45 = vadd.s32 %v2028_v58, %v2002_v2  ;;  %v5054_v41 = vadd.s32 %v2028_v58, %v2003_v54  ;;  %v5056_v40 = vadd.s32 %v2028_v58, %v2004_v3 }
 0x2e1   : > { %v5058_v39 = vadd.s32 %v2028_v58, %v2005_v5  ;;  %v5060_v35 = vadd.s32 %v2028_v58, %v2006_v6  ;;  %v5062_v49 = vadd.s32 %v2028_v58, %v2007_v7  ;;  %v5064_v56 = vadd.s32 %v2028_v58, %v2008_v12 }
 0x2e2   : > { %v5066_v57 = vadd.s32 %v2028_v58, %v2009_v13  ;;  %v5068_v59 = vadd.s32 %v2028_v58, %v2010_v14  ;;  %v5070_v60 = vadd.s32 %v2028_v58, %v2011_v18  ;;  %v5072_v61 = vadd.s32 %v2028_v58, %v2012_v19 }
 0x2e3   : > { %v5074_v2 = vadd.s32 %v2028_v58, %v2013_v20  ;;  %v5076_v54 = vadd.s32 %v2028_v58, %v2014_v24  ;;  %v5078_v3 = vadd.s32 %v2028_v58, %v2015_v25  ;;  %v5080_v5 = vadd.s32 %v2028_v58, %v2016_v26 }
 0x2e4   : > { %v5082_v6 = vadd.s32 %v2028_v58, %v2017_v31  ;;  %v5084_v7 = vadd.s32 %v2028_v58, %v2018_v32  ;;  %v5086_v12 = vadd.s32 %v2028_v58, %v2019_v29  ;;  %v5088_v13 = vadd.s32 %v2028_v58, %v2020_v36  ;;  %v5845_v36 = vld [vmem:[#allocation18_spill] sm:$0xff] }
 0x2e5   : > { %v5090_v14 = vadd.s32 %v2028_v58, %v2021_v37  ;;  %v5092_v18 = vadd.s32 %v2028_v58, %v2022_v38  ;;  %v5094_v19 = vadd.s32 %v2028_v58, %v2023_v42  ;;  %v5096_v20 = vadd.s32 %v2028_v58, %v2024_v43  ;;  %v5846_v38 = vld [vmem:[#allocation19_spill] sm:$0xff]  ;;  %v5847_v43 = vld [vmem:[#allocation20_spill] sm:$0xff] }
 0x2e6   : > { %v5098_v24 = vadd.s32 %v2028_v58, %v2025_v44  ;;  %v5100_v25 = vadd.s32 %v2028_v58, %v2026_v48  ;;  %v5102_v26 = vadd.s32 %v2028_v58, %v2027_v55  ;;  %vm2061_vm0 = vcmp.lt.s32.totalorder %v2029_v53, 500  ;;  %v5848_v48 = vld [vmem:[#allocation21_spill] sm:$0xff] }
 0x2e7   : > { %vm2062_vm1 = vcmp.lt.s32.totalorder %v2030_v52, 500  ;;  %vm2063_vm2 = vcmp.lt.s32.totalorder %v5044_v51, 500  ;;  %vm2064_vm3 = vcmp.lt.s32.totalorder %v5046_v50, 500  ;;  %vm2065_vm4 = vcmp.lt.s32.totalorder %v5048_v47, 500 }
 0x2e8   : > { %vm2066_vm5 = vcmp.lt.s32.totalorder %v5050_v46, 500  ;;  %vm2076_vm15 = vcmp.lt.s32.totalorder %v5070_v60, 500  ;;  %vm2077_vm6 = vcmp.lt.s32.totalorder %v5072_v61, 500  ;;  %vm2078_vm7 = vcmp.lt.s32.totalorder %v5074_v2, 500  ;;  %v5843_v46 = vld [vmem:[#allocation17_spill] sm:$0xff] }
 0x2e9   : > { %v5129_v55 = vsel %vm2061_vm0, %v4848_v62, 0.0  ;;  %v2094_v58 = vsel %vm2062_vm1, %v4850_v63, 0.0  ;;  %vm2086_vm8 = vcmp.lt.s32.totalorder %v5090_v14, 500  ;;  %vm2087_vm9 = vcmp.lt.s32.totalorder %v5092_v18, 500 }
 0x2ea   : > { %vm2088_vm10 = vcmp.lt.s32.totalorder %v5094_v19, 500  ;;  %vm2089_vm11 = vcmp.lt.s32.totalorder %v5096_v20, 500  ;;  %vm2090_vm12 = vcmp.lt.s32.totalorder %v5098_v24, 500  ;;  %vm2091_vm13 = vcmp.lt.s32.totalorder %v5100_v25, 500 }
 0x2eb   : > { %vm2092_vm14 = vcmp.lt.s32.totalorder %v5102_v26, 500  ;;  %v2095_v62 = vsel %vm2063_vm2, %v4852_v1, 0.0  ;;  %v2096_v63 = vsel %vm2064_vm3, %v4854_v4, 0.0  ;;  %v2097_v52 = vsel %vm2065_vm4, %v4856_v0, 0.0 }
 0x2ec   : > { %v2098_v53 = vsel %vm2066_vm5, %v4858_v9, 0.0  ;;  %v2290_v31 = vadd.f32 %v2094_v58, %v5129_v55  ;;  %vm5824_vm0 = vcmp.lt.s32.totalorder %v5052_v45, 500  ;;  %vm5825_vm1 = vcmp.lt.s32.totalorder %v5054_v41, 500  ;;  %v5839_v41 = vld [vmem:[#allocation15_spill] sm:$0xff]  ;;  %v5841_v45 = vld [vmem:[#allocation16_spill] sm:$0xff] }
 0x2ed   : > { %v5156_v51 = vsel %vm5824_vm0, %v4860_v8, 0.0  ;;  %v5161_v1 = vsel %vm5825_vm1, %v4862_v10, 0.0  ;;  %vm5826_vm2 = vcmp.lt.s32.totalorder %v5056_v40, 500  ;;  %vm5827_vm3 = vcmp.lt.s32.totalorder %v5058_v39, 500  ;;  %v5835_v39 = vld [vmem:[#allocation13_spill] sm:$0xff]  ;;  %v5837_v40 = vld [vmem:[#allocation14_spill] sm:$0xff] }
 0x2ee   : > { %v5166_v4 = vsel %vm5826_vm2, %v4864_v11, 0.0  ;;  %v5171_v0 = vsel %vm5827_vm3, %v4866_v15, 0.0  ;;  %vm5828_vm4 = vcmp.lt.s32.totalorder %v5060_v35, 500  ;;  %vm5829_vm5 = vcmp.lt.s32.totalorder %v5062_v49, 500 }
 0x2ef   : > { %v5176_v9 = vsel %vm5828_vm4, %v4868_v16, 0.0  ;;  %v5181_v8 = vsel %vm5829_vm5, %v4870_v17, 0.0  ;;  %vm5830_vm0 = vcmp.lt.s32.totalorder %v5064_v56, 500  ;;  %v2291_v11 = vadd.f32 %v2290_v31, %v2095_v62  ;;  %v5849_v56 = vld [vmem:[#allocation22_spill] sm:$0xff] }
 0x2f0   : > { %v5186_v10 = vsel %vm5830_vm0, %v4872_v21, 0.0  ;;  %vm5831_vm1 = vcmp.lt.s32.totalorder %v5066_v57, 500  ;;  %vm5832_vm2 = vcmp.lt.s32.totalorder %v5068_v59, 500  ;;  %v5201_v17 = vsel %vm2076_vm15, %v4878_v27, 0.0  ;;  %v5850_v59 = vld [vmem:[#allocation23_spill] sm:$0xff] }
 0x2f1   : > { %v5191_v15 = vsel %vm5831_vm1, %v4874_v22, 0.0  ;;  %v5196_v16 = vsel %vm5832_vm2, %v4876_v23, 0.0  ;;  %v5206_v21 = vsel %vm2077_vm6, %v4880_v28, 0.0  ;;  %v5212_v22 = vsel %vm2078_vm7, %v4882_v30, 0.0 }
 0x2f2   : > { %vm5833_vm3 = vcmp.lt.s32.totalorder %v5076_v54, 500  ;;  %vm5834_vm15 = vcmp.lt.s32.totalorder %v5078_v3, 500  ;;  %v2292_v35 = vadd.f32 %v2291_v11, %v2096_v63  ;;  %vm5836_vm6 = vcmp.lt.s32.totalorder %v5080_v5, 500  ;;  %v5851_v54 = vld [vmem:[#allocation24_spill] sm:$0xff] }
 0x2f3   : > { %v5217_v23 = vsel %vm5833_vm3, %v4884_v33, 0.0  ;;  %v5222_v27 = vsel %vm5834_vm15, %v4886_v34, 0.0  ;;  %v5227_v28 = vsel %vm5836_vm6, %v5835_v39, 0.0  ;;  %vm5838_vm7 = vcmp.lt.s32.totalorder %v5082_v6, 500 }
 0x2f4   : > { %v5232_v30 = vsel %vm5838_vm7, %v5837_v40, 0.0  ;;  %vm5840_vm4 = vcmp.lt.s32.totalorder %v5084_v7, 500  ;;  %vm5842_vm5 = vcmp.lt.s32.totalorder %v5086_v12, 500  ;;  %vm5844_vm0 = vcmp.lt.s32.totalorder %v5088_v13, 500 }
 0x2f5   : > { %v5237_v33 = vsel %vm5840_vm4, %v5839_v41, 0.0  ;;  %v5242_v34 = vsel %vm5842_vm5, %v5841_v45, 0.0  ;;  %v5247_v47 = vsel %vm5844_vm0, %v5843_v46, 0.0  ;;  %v2293_v50 = vadd.f32 %v2292_v35, %v2097_v52 }
 0x2f6   : > { %v2330_v32 = vmul.f32 %v5129_v55, %v5129_v55  ;;  %v2331_v29 = vmul.f32 %v2094_v58, %v2094_v58  ;;  %v5254_v37 = vsel %vm2086_vm8, %v5845_v36, 0.0  ;;  %v5259_v42 = vsel %vm2087_vm9, %v5846_v38, 0.0 }
 0x2f7   : > { %v5264_v44 = vsel %vm2088_vm10, %v5847_v43, 0.0  ;;  %v5269_v49 = vsel %vm2089_vm11, %v5848_v48, 0.0  ;;  %v5274_v57 = vsel %vm2090_vm12, %v5849_v56, 0.0  ;;  %v5279_v60 = vsel %vm2091_vm13, %v5850_v59, 0.0 }
 0x2f8   : > { %v2294_v61 = vadd.f32 %v2293_v50, %v2098_v53  ;;  %v2332_v2 = vmul.f32 %v2095_v62, %v2095_v62  ;;  %v5284_v3 = vsel %vm2092_vm14, %v5851_v54, 0.0  ;;  %v2333_v5 = vmul.f32 %v2096_v63, %v2096_v63 }
 0x2f9   : > { %v2334_v6 = vmul.f32 %v2097_v52, %v2097_v52  ;;  %v2335_v7 = vmul.f32 %v2098_v53, %v2098_v53  ;;  %v2362_v13 = vadd.f32 %v2331_v29, %v2330_v32  ;;  %v3813_v14 = vpack.c.bf16 %v2094_v58, %v5129_v55 }
 0x2fa   : > { %v2295_v12 = vadd.f32 %v2294_v61, %v5156_v51  ;;  %v3818_v18 = vpack.c.bf16 %v2096_v63, %v2095_v62  ;;  %v3823_v19 = vpack.c.bf16 %v2098_v53, %v2097_v52  ;;  %v3828_v20 = vpack.c.bf16 %v5161_v1, %v5156_v51 }
 0x2fb   : > { %v3833_v24 = vpack.c.bf16 %v5171_v0, %v5166_v4  ;;  %v3838_v25 = vpack.c.bf16 %v5181_v8, %v5176_v9  ;;  %v2363_v31 = vadd.f32 %v2362_v13, %v2332_v2  ;;  %3814 = vst [vmem:[%s5295_s12] sm:$0xff] %v3813_v14   ;;  %v3843_v55 = vpack.c.bf16 %v5191_v15, %v5186_v10 }
 0x2fc   : > { %v2296_v26 = vadd.f32 %v2295_v12, %v5161_v1  ;;  %3935 = vst [vmem:[%s5295_s12 + $0x8] sm:$0xff] %v3818_v18   ;;  %v3848_v58 = vpack.c.bf16 %v5201_v17, %v5196_v16  ;;  %3936 = vst [vmem:[%s5295_s12 + $0x10] sm:$0xff] %v3823_v19   ;;  %v3853_v62 = vpack.c.bf16 %v5212_v22, %v5206_v21 }
 0x2fd   : > { %3937 = vst [vmem:[%s5295_s12 + $0x18] sm:$0xff] %v3828_v20   ;;  %3938 = vst [vmem:[%s5295_s12 + $0x20] sm:$0xff] %v3833_v24   ;;  %v3858_v63 = vpack.c.bf16 %v5222_v27, %v5217_v23  ;;  %v3863_v52 = vpack.c.bf16 %v5232_v30, %v5227_v28  ;;  %v3868_v53 = vpack.c.bf16 %v5242_v34, %v5237_v33 }
 0x2fe   : > { %3939 = vst [vmem:[%s5295_s12 + $0x28] sm:$0xff] %v3838_v25   ;;  %v2297_v11 = vadd.f32 %v2296_v26, %v5166_v4  ;;  %v2364_v35 = vadd.f32 %v2363_v31, %v2333_v5  ;;  %3940 = vst [vmem:[%s5295_s12 + $0x30] sm:$0xff] %v3843_v55   ;;  %v3873_v39 = vpack.c.bf16 %v5254_v37, %v5247_v47 }
 0x2ff   : > { %3941 = vst [vmem:[%s5295_s12 + $0x38] sm:$0xff] %v3848_v58   ;;  %v3878_v40 = vpack.c.bf16 %v5264_v44, %v5259_v42  ;;  %3942 = vst [vmem:[%s5295_s12 + $0x40] sm:$0xff] %v3853_v62   ;;  %v3883_v41 = vpack.c.bf16 %v5274_v57, %v5269_v49  ;;  %v3888_v45 = vpack.c.bf16 %v5284_v3, %v5279_v60 }
 0x300   : > { %3943 = vst [vmem:[%s5295_s12 + $0x48] sm:$0xff] %v3858_v63   ;;  %3944 = vst [vmem:[%s5295_s12 + $0x50] sm:$0xff] %v3863_v52   ;;  %v2298_v46 = vadd.f32 %v2297_v11, %v5171_v0  ;;  %v2336_v50 = vmul.f32 %v5156_v51, %v5156_v51  ;;  %v2365_v32 = vadd.f32 %v2364_v35, %v2334_v6 }
 0x301   : > { %3945 = vst [vmem:[%s5295_s12 + $0x58] sm:$0xff] %v3868_v53   ;;  %3946 = vst [vmem:[%s5295_s12 + $0x60] sm:$0xff] %v3873_v39   ;;  %v2337_v36 = vmul.f32 %v5161_v1, %v5161_v1  ;;  %v2338_v48 = vmul.f32 %v5166_v4, %v5166_v4  ;;  %v2339_v51 = vmul.f32 %v5171_v0, %v5171_v0 }
 0x302   : > { %3947 = vst [vmem:[%s5295_s12 + $0x68] sm:$0xff] %v3878_v40   ;;  %3948 = vst [vmem:[%s5295_s12 + $0x70] sm:$0xff] %v3883_v41   ;;  %v2299_v29 = vadd.f32 %v2298_v46, %v5176_v9  ;;  %v2366_v38 = vadd.f32 %v2365_v32, %v2335_v7  ;;  %v2340_v54 = vmul.f32 %v5176_v9, %v5176_v9 }
 0x303   : > { %3949 = vst [vmem:[%s5295_s12 + $0x78] sm:$0xff] %v3888_v45   ;;  %v2341_v6 = vmul.f32 %v5181_v8, %v5181_v8  ;;  %v2342_v12 = vmul.f32 %v5186_v10, %v5186_v10  ;;  %v2343_v14 = vmul.f32 %v5191_v15, %v5191_v15  ;;  %v2344_v19 = vmul.f32 %v5196_v16, %v5196_v16 }
 0x304   : > { %v2300_v43 = vadd.f32 %v2299_v29, %v5181_v8  ;;  %v2367_v56 = vadd.f32 %v2366_v38, %v2336_v50  ;;  %v2345_v24 = vmul.f32 %v5201_v17, %v5201_v17  ;;  %v2346_v26 = vmul.f32 %v5206_v21, %v5206_v21 }
 0x305   : > { %v2347_v55 = vmul.f32 %v5212_v22, %v5212_v22  ;;  %v2348_v62 = vmul.f32 %v5217_v23, %v5217_v23  ;;  %v2349_v52 = vmul.f32 %v5222_v27, %v5222_v27  ;;  %v2350_v11 = vmul.f32 %v5227_v28, %v5227_v28 }
 0x306   : > { %v2301_v59 = vadd.f32 %v2300_v43, %v5186_v10  ;;  %v2368_v61 = vadd.f32 %v2367_v56, %v2337_v36  ;;  %v2351_v39 = vmul.f32 %v5232_v30, %v5232_v30  ;;  %v2352_v41 = vmul.f32 %v5237_v33, %v5237_v33 }
 0x307   : > { %v2353_v46 = vmul.f32 %v5242_v34, %v5242_v34  ;;  %v2354_v32 = vmul.f32 %v5247_v47, %v5247_v47  ;;  %v2355_v36 = vmul.f32 %v5254_v37, %v5254_v37  ;;  %v2356_v43 = vmul.f32 %v5259_v42, %v5259_v42 }
 0x308   : > { %v2302_v2 = vadd.f32 %v2301_v59, %v5191_v15  ;;  %v2369_v5 = vadd.f32 %v2368_v61, %v2338_v48  ;;  %v2357_v56 = vmul.f32 %v5264_v44, %v5264_v44 }
 0x30a   : > { %v2303_v1 = vadd.f32 %v2302_v2, %v5196_v16  ;;  %v2370_v7 = vadd.f32 %v2369_v5, %v2339_v51  ;;  %v2358_v51 = vmul.f32 %v5269_v49, %v5269_v49  ;;  %v2359_v2 = vmul.f32 %v5274_v57, %v5274_v57 }
 0x30c   : > { %v2304_v4 = vadd.f32 %v2303_v1, %v5201_v17  ;;  %v2371_v13 = vadd.f32 %v2370_v7, %v2340_v54 }
 0x30e   : > { %v2305_v0 = vadd.f32 %v2304_v4, %v5206_v21  ;;  %v2372_v18 = vadd.f32 %v2371_v13, %v2341_v6 }
 0x310   : > { %v2306_v9 = vadd.f32 %v2305_v0, %v5212_v22  ;;  %v2373_v20 = vadd.f32 %v2372_v18, %v2342_v12  ;;  %v2289_v0 = vld [vmem:[#allocation5] sm:$0x1] }
 0x312   : > { %v2307_v8 = vadd.f32 %v2306_v9, %v5217_v23  ;;  %v2374_v25 = vadd.f32 %v2373_v20, %v2343_v14 }
 0x314   : > { %v2308_v10 = vadd.f32 %v2307_v8, %v5222_v27  ;;  %v2375_v31 = vadd.f32 %v2374_v25, %v2344_v19  ;;  %v2329_v8 = vld [vmem:[#allocation6] sm:$0x1] }
 0x316   : > { %v2309_v15 = vadd.f32 %v2308_v10, %v5227_v28  ;;  %v2376_v58 = vadd.f32 %v2375_v31, %v2345_v24 }
 0x318   : > { %v2310_v16 = vadd.f32 %v2309_v15, %v5232_v30  ;;  %v2377_v63 = vadd.f32 %v2376_v58, %v2346_v26 }
 0x31a   : > { %v2311_v17 = vadd.f32 %v2310_v16, %v5237_v33  ;;  %v2378_v53 = vadd.f32 %v2377_v63, %v2347_v55 }
 0x31c   : > { %v2312_v21 = vadd.f32 %v2311_v17, %v5242_v34  ;;  %v2379_v35 = vadd.f32 %v2378_v53, %v2348_v62  ;;  %v2410_v62 = vld [vmem:[%s512_s22] sm:$0x1] }
 0x31e   : > { %v2313_v22 = vadd.f32 %v2312_v21, %v5247_v47  ;;  %v2380_v40 = vadd.f32 %v2379_v35, %v2349_v52  ;;  %v2413_v52 = vld [vmem:[%s519_s25] sm:$0x1] }
 0x320   : > { %v2314_v23 = vadd.f32 %v2313_v22, %v5254_v37  ;;  %v2381_v45 = vadd.f32 %v2380_v40, %v2350_v11 }
 0x322   : > { %v2315_v27 = vadd.f32 %v2314_v23, %v5259_v42  ;;  %v2382_v50 = vadd.f32 %v2381_v45, %v2351_v39  ;;  %v2360_v42 = vmul.f32 %v5279_v60, %v5279_v60 }
 0x324   : > { %v2316_v28 = vadd.f32 %v2315_v27, %v5264_v44  ;;  %v2383_v29 = vadd.f32 %v2382_v50, %v2352_v41  ;;  %v2361_v44 = vmul.f32 %v5284_v3, %v5284_v3 }
 0x326   : > { %v2317_v30 = vadd.f32 %v2316_v28, %v5269_v49  ;;  %v2384_v38 = vadd.f32 %v2383_v29, %v2353_v46 }
 0x328   : > { %v2318_v33 = vadd.f32 %v2317_v30, %v5274_v57  ;;  %v2385_v48 = vadd.f32 %v2384_v38, %v2354_v32 }
 0x32a   : > { %v2319_v34 = vadd.f32 %v2318_v33, %v5279_v60  ;;  %v2386_v59 = vadd.f32 %v2385_v48, %v2355_v36 }
 0x32c   : > { %v2320_v47 = vadd.f32 %v2319_v34, %v5284_v3  ;;  %v2387_v61 = vadd.f32 %v2386_v59, %v2356_v43 }
 0x32e   : > { %v2321_v37 = vrot.slane %v2320_v47, 4  ;;  %v2388_v54 = vadd.f32 %v2387_v61, %v2357_v56 }
 0x330   : > { %v2322_v5 = vadd.f32 %v2321_v37, %v2320_v47  ;;  %v2389_v1 = vadd.f32 %v2388_v54, %v2358_v51 }
 0x332   : > { %v2323_v6 = vrot.slane %v2322_v5, 2  ;;  %v2390_v7 = vadd.f32 %v2389_v1, %v2359_v2 }
 0x334   : > { %v2324_v4 = vadd.f32 %v2323_v6, %v2322_v5  ;;  %v2391_v12 = vadd.f32 %v2390_v7, %v2360_v42 }
 0x336   : > { %v2325_v13 = vrot.slane %v2324_v4, 1  ;;  %v2392_v49 = vadd.f32 %v2391_v12, %v2361_v44 }
 0x338   : > { %v2326_v14 = vadd.f32 %v2325_v13, %v2324_v4  ;;  %v2393_v18 = vrot.slane %v2392_v49, 4 }
 0x33a   : > { %v2327_v9 = vadd.f32 %v2326_v14, %v2289_v0  ;;  %v2394_v57 = vadd.f32 %v2393_v18, %v2392_v49 }
 0x33c   : > { %2328 = vst [vmem:[#allocation5] sm:$0x1] %v2327_v9  ;;  %v2395_v19 = vrot.slane %v2394_v57, 2 }
 0x33e   : > { %v2396_v20 = vadd.f32 %v2395_v19, %v2394_v57 }
 0x340   : > { %v2397_v60 = vrot.slane %v2396_v20, 1 }
 0x342   : > { %v2398_v24 = vadd.f32 %v2397_v60, %v2396_v20 }
 0x343   : > { %v2401_v3 = vld [vmem:[#allocation5] sm:$0x1] }
 0x344   : > { %v2399_v25 = vadd.f32 %v2398_v24, %v2329_v8  ;;  %v2402_v10 = vmul.f32 0.002, %v2401_v3 }
 0x346   : > { %2400 = vst [vmem:[#allocation6] sm:$0x1] %v2399_v25  ;;  %v2405_v26 = vmul.f32 %v2402_v10, %v2402_v10 }
 0x34d   : > { %v2403_v31 = vld [vmem:[#allocation6] sm:$0x1] }
 0x34e   : > { %v2404_v15 = vmul.f32 0.002, %v2403_v31 }
 0x350   : > { %v2406_v55 = vsub.f32 %v2404_v15, %v2405_v26 }
 0x352   : > { %v2407_v58 = vmax.f32 %v2406_v55, 0.0 }
 0x354   : > { %v2408_v16 = vadd.f32 1e-05, %v2407_v58 }
 0x356   : > { %4303 = vrsqrt.f32 %v2408_v16 }
 0x363   : > { %v4304_v63 = vpop.eup %4303 }
 0x364   : > { %v2411_v17 = vmul.f32 %v4304_v63, %v2410_v62 }
 0x366   : > { %2412 = vst [vmem:[#allocation7] sm:$0x1] %v2411_v17  ;;  %v2414_v53 = vmul.f32 %v2411_v17, %v2402_v10 }
 0x368   : > { %v2415_v21 = vsub.f32 %v2413_v52, %v2414_v53 }
 0x36a   : > { %2416 = vst [vmem:[#allocation8] sm:$0x1] %v2415_v21 }
 0x36b PF: > { %p3462_p6 = scmp.ne.s32.totalorder %s4483_s10, 2 }
 0x36d   : > { %2420 = sbr.rel (%p3462_p6) target bundleno = 1487 (0x5cf), region = 88 }
 0x372   : > { %v4305_v11 = vld [vmem:[%s5789_s5 + $0x38] sm:$0xff]   ;;  %v4306_v35 = vld [vmem:[%s5789_s5 + $0x30] sm:$0xff]   ;;  %v4307_v22 = vld [vmem:[%s5789_s5 + $0x28] sm:$0xff]  }
 0x373   : > { %4118 = vmatprep.subr.bf16.mxu0 %v4305_v11  ;;  %4198 = vmatprep.subr.bf16.mxu1 %v4305_v11  ;;  %v4308_v39 = vld [vmem:[%s5789_s5 + $0x20] sm:$0xff]   ;;  %v4309_v41 = vld [vmem:[%s5789_s5 + $0x18] sm:$0xff]   ;;  %v4310_v45 = vld [vmem:[%s5789_s5 + $0x10] sm:$0xff]  }
 0x374   : > { %4119 = vmatpush3.bf16.msra.mxu0 %v4305_v11  ;;  %4206 = vmatpush3.bf16.msra.mxu1 %v4305_v11  ;;  %v4313_v40 = vld [vmem:[#allocation3] sm:$0xff]   ;;  %v4311_v27 = vld [vmem:[%s5789_s5 + $0x8] sm:$0xff]   ;;  %v4317_v32 = vld [vmem:[#allocation3 + $0x10] sm:$0xff]  }
 0x375   : > { %4120 = vmatprep.subr.bf16.mxu0 %v4306_v35  ;;  %4199 = vmatprep.subr.bf16.mxu1 %v4306_v35  ;;  %v4314_v23 = vld [vmem:[#allocation3 + $0x40] sm:$0xff]   ;;  %v4315_v50 = vld [vmem:[#allocation3 + $0x8] sm:$0xff]   ;;  %v4319_v29 = vld [vmem:[#allocation3 + $0x50] sm:$0xff]  }
 0x376   : > { %4134 = vmatprep.mubr.bf16.mxu0 %v4313_v40  ;;  %4150 = vmatprep.mubr.bf16.mxu1 %v4314_v23  ;;  %v4312_v46 = vld [vmem:[%s5789_s5] sm:$0xff]   ;;  %v4316_v28 = vld [vmem:[#allocation3 + $0x48] sm:$0xff]   ;;  %v4318_v30 = vld [vmem:[#allocation3 + $0x18] sm:$0xff]  }
 0x377   : > { %v4320_v36 = vld [vmem:[#allocation3 + $0x58] sm:$0xff]   ;;  %v4321_v38 = vld [vmem:[#allocation3 + $0x20] sm:$0xff]   ;;  %v4322_v43 = vld [vmem:[#allocation3 + $0x28] sm:$0xff]  }
 0x378   : > { %4121 = vmatpush3.bf16.msra.mxu0 %v4306_v35  ;;  %4207 = vmatpush3.bf16.msra.mxu1 %v4306_v35  ;;  %v4323_v33 = vld [vmem:[#allocation3 + $0x60] sm:$0xff]   ;;  %v4324_v48 = vld [vmem:[#allocation3 + $0x68] sm:$0xff]   ;;  %v4325_v34 = vld [vmem:[#allocation3 + $0x30] sm:$0xff]  }
 0x379   : > { %4122 = vmatprep.subr.bf16.mxu0 %v4307_v22  ;;  %4200 = vmatprep.subr.bf16.mxu1 %v4307_v22  ;;  %v4327_v56 = vld [vmem:[#allocation3 + $0x70] sm:$0xff]   ;;  %v4326_v59 = vld [vmem:[#allocation3 + $0x38] sm:$0xff]   ;;  %v5447_v51 = vld [vmem:[%s5790_s6] ss:$0 sm:$0xff] }
 0x37a   : > { %v4328_v47 = vld [vmem:[#allocation3 + $0x78] sm:$0xff]  }
 0x37c   : > { %4123 = vmatpush3.bf16.msra.mxu0 %v4307_v22  ;;  %4208 = vmatpush3.bf16.msra.mxu1 %v4307_v22 }
 0x37d   : > { %4124 = vmatprep.subr.bf16.mxu0 %v4308_v39  ;;  %4201 = vmatprep.subr.bf16.mxu1 %v4308_v39 }
 0x380   : > { %4125 = vmatpush3.bf16.msra.mxu0 %v4308_v39  ;;  %4209 = vmatpush3.bf16.msra.mxu1 %v4308_v39 }
 0x381   : > { %4126 = vmatprep.subr.bf16.mxu0 %v4309_v41  ;;  %4202 = vmatprep.subr.bf16.mxu1 %v4309_v41 }
 0x384   : > { %4127 = vmatpush3.bf16.msra.mxu0 %v4309_v41  ;;  %4210 = vmatpush3.bf16.msra.mxu1 %v4309_v41 }
 0x385   : > { %4128 = vmatprep.subr.bf16.mxu0 %v4310_v45  ;;  %4203 = vmatprep.subr.bf16.mxu1 %v4310_v45 }
 0x388   : > { %4129 = vmatpush3.bf16.msra.mxu0 %v4310_v45  ;;  %4211 = vmatpush3.bf16.msra.mxu1 %v4310_v45 }
 0x389   : > { %4130 = vmatprep.subr.bf16.mxu0 %v4311_v27  ;;  %4204 = vmatprep.subr.bf16.mxu1 %v4311_v27 }
 0x38c   : > { %4131 = vmatpush3.bf16.msra.mxu0 %v4311_v27  ;;  %4212 = vmatpush3.bf16.msra.mxu1 %v4311_v27 }
 0x38d   : > { %4132 = vmatprep.subr.bf16.mxu0 %v4312_v46  ;;  %4205 = vmatprep.subr.bf16.mxu1 %v4312_v46 }
 0x390   : > { %4133 = vmatpush3.bf16.msra.mxu0 %v4312_v46  ;;  %4213 = vmatpush3.bf16.msra.mxu1 %v4312_v46 }
 0x393   : > { %4135 = vmatmul.mubr.bf16.vlgmr.msra.gmra.mxu0 %v4315_v50  ;;  %4151 = vmatmul.mubr.bf16.vlgmr.msra.gmra.mxu1 %v4316_v28 }
 0x394   : > { %4138 = vmatprep.mubr.bf16.mxu0 %v4317_v32  ;;  %4154 = vmatprep.mubr.bf16.mxu1 %v4319_v29 }
 0x39b   : > { %4139 = vmatmul.mubr.bf16.gmra.mxu0 %v4318_v30  ;;  %4155 = vmatmul.mubr.bf16.gmra.mxu1 %v4320_v36 }
 0x39c   : > { %4142 = vmatprep.mubr.bf16.mxu0 %v4321_v38  ;;  %4158 = vmatprep.mubr.bf16.mxu1 %v4323_v33 }
 0x3a3   : > { %4143 = vmatmul.mubr.bf16.gmra.mxu0 %v4322_v43  ;;  %4159 = vmatmul.mubr.bf16.gmra.mxu1 %v4324_v48 }
 0x3a4   : > { %4146 = vmatprep.mubr.bf16.mxu0 %v4325_v34  ;;  %4162 = vmatprep.mubr.bf16.mxu1 %v4327_v56 }
 0x3ab   : > { %4147 = vmatmul.mubr.bf16.gmra.mxu0 %v4326_v59  ;;  %4163 = vmatmul.mubr.bf16.gmra.mxu1 %v4328_v47 }
 0x453   : > { %v4136_v61 = vpop.f32.mrf.mxu0  ;;  %v4152_v37 = vpop.f32.mrf.mxu1 }
 0x454   : > { %v5450_v2 = vadd.f32 %v4136_v61, %v5447_v51  ;;  %v5453_v54 = vadd.f32 %v4152_v37, %v5447_v51 }
 0x455   : > { %v2654_v5 = vpop.f32.mrf.mxu0  ;;  %v2718_v42 = vpop.f32.mrf.mxu1 }
 0x456   : > { %2817 = vmax.xlane.f32.xlu0 %v5453_v54  ;;  %2785 = vmax.xlane.f32.xlu1 %v5450_v2  ;;  %v5458_v44 = vadd.f32 %v5447_v51, %v2654_v5  ;;  %v5466_v49 = vadd.f32 %v5447_v51, %v2718_v42 }
 0x457   : > { %v4137_v1 = vpop.f32.mrf.mxu0  ;;  %v4153_v6 = vpop.f32.mrf.mxu1 }
 0x458   : > { %v5461_v7 = vadd.f32 %v4137_v1, %v5447_v51  ;;  %v5469_v0 = vadd.f32 %v4153_v6, %v5447_v51 }
 0x459   : > { %v2657_v4 = vpop.f32.mrf.mxu0  ;;  %v2721_v12 = vpop.f32.mrf.mxu1 }
 0x45a   : > { %2787 = vmax.xlane.f32.xlu1 %v5461_v7  ;;  %2781 = vmax.xlane.f32.xlu0 %v5458_v44  ;;  %v5474_v9 = vadd.f32 %v5447_v51, %v2657_v4  ;;  %v5477_v57 = vadd.f32 %v5447_v51, %v2721_v12 }
 0x45b   : > { %v4140_v13 = vpop.f32.mrf.mxu0  ;;  %v4156_v18 = vpop.f32.mrf.mxu1 }
 0x45c   : > { %v5480_v60 = vadd.f32 %v4140_v13, %v5447_v51  ;;  %v5488_v25 = vadd.f32 %v4156_v18, %v5447_v51 }
 0x45d   : > { %v2670_v14 = vpop.f32.mrf.mxu0  ;;  %v2734_v20 = vpop.f32.mrf.mxu1 }
 0x45e   : > { %2819 = vmax.xlane.f32.xlu1 %v5469_v0  ;;  %2813 = vmax.xlane.f32.xlu0 %v5466_v49  ;;  %v5498_v15 = vadd.f32 %v5447_v51, %v2670_v14  ;;  %v5506_v62 = vadd.f32 %v5447_v51, %v2734_v20 }
 0x45f   : > { %v4141_v19 = vpop.f32.mrf.mxu0  ;;  %v4157_v24 = vpop.f32.mrf.mxu1 }
 0x460   : > { %v5483_v8 = vadd.f32 %v4141_v19, %v5447_v51  ;;  %v5491_v3 = vadd.f32 %v4157_v24, %v5447_v51 }
 0x461   : > { %v2673_v10 = vpop.f32.mrf.mxu0  ;;  %v2737_v31 = vpop.f32.mrf.mxu1 }
 0x462   : > { %2815 = vmax.xlane.f32.xlu1 %v5477_v57  ;;  %2783 = vmax.xlane.f32.xlu0 %v5474_v9  ;;  %v5501_v55 = vadd.f32 %v5447_v51, %v2673_v10  ;;  %v5509_v63 = vadd.f32 %v5447_v51, %v2737_v31 }
 0x463   : > { %v4144_v26 = vpop.f32.mrf.mxu0  ;;  %v4160_v16 = vpop.f32.mrf.mxu1 }
 0x464   : > { %v5512_v53 = vadd.f32 %v4144_v26, %v5447_v51  ;;  %v5520_v35 = vadd.f32 %v4160_v16, %v5447_v51 }
 0x465   : > { %v2686_v58 = vpop.f32.mrf.mxu0  ;;  %v2750_v52 = vpop.f32.mrf.mxu1 }
 0x466   : > { %2795 = vmax.xlane.f32.xlu1 %v5483_v8  ;;  %2793 = vmax.xlane.f32.xlu0 %v5480_v60  ;;  %v5530_v41 = vadd.f32 %v5447_v51, %v2686_v58  ;;  %v5538_v50 = vadd.f32 %v5447_v51, %v2750_v52 }
 0x467   : > { %v4145_v17 = vpop.f32.mrf.mxu0  ;;  %v4161_v11 = vpop.f32.mrf.mxu1 }
 0x468   : > { %v5515_v21 = vadd.f32 %v4145_v17, %v5447_v51  ;;  %v5523_v22 = vadd.f32 %v4161_v11, %v5447_v51 }
 0x469   : > { %v2689_v39 = vpop.f32.mrf.mxu0  ;;  %v2753_v23 = vpop.f32.mrf.mxu1 }
 0x46a   : > { %2827 = vmax.xlane.f32.xlu1 %v5491_v3  ;;  %2825 = vmax.xlane.f32.xlu0 %v5488_v25  ;;  %v5533_v45 = vadd.f32 %v5447_v51, %v2689_v39  ;;  %v5541_v28 = vadd.f32 %v5447_v51, %v2753_v23 }
 0x46b   : > { %v4148_v40 = vpop.f32.mrf.mxu0  ;;  %v4164_v46 = vpop.f32.mrf.mxu1 }
 0x46c   : > { %v5544_v30 = vadd.f32 %v4148_v40, %v5447_v51  ;;  %v5570_v47 = vadd.f32 %v4164_v46, %v5447_v51 }
 0x46d   : > { %v2702_v27 = vpop.f32.mrf.mxu0  ;;  %v2766_v29 = vpop.f32.mrf.mxu1 }
 0x46e   : > { %2791 = vmax.xlane.f32.xlu1 %v5501_v55  ;;  %2789 = vmax.xlane.f32.xlu0 %v5498_v15  ;;  %v5554_v43 = vadd.f32 %v5447_v51, %v2702_v27  ;;  %v5562_v56 = vadd.f32 %v5447_v51, %v2766_v29 }
 0x46f   : > { %v4149_v32 = vpop.f32.mrf.mxu0  ;;  %v4165_v33 = vpop.f32.mrf.mxu1 }
 0x470   : > { %v5547_v36 = vadd.f32 %v4149_v32, %v5447_v51  ;;  %v5573_v61 = vadd.f32 %v4165_v33, %v5447_v51 }
 0x471   : > { %v2705_v38 = vpop.f32.mrf.mxu0  ;;  %v2769_v34 = vpop.f32.mrf.mxu1 }
 0x472   : > { %2823 = vmax.xlane.f32.xlu1 %v5509_v63  ;;  %2821 = vmax.xlane.f32.xlu0 %v5506_v62  ;;  %v5557_v48 = vadd.f32 %v5447_v51, %v2705_v38  ;;  %v5565_v59 = vadd.f32 %v5447_v51, %v2769_v34 }
 0x476   : > { %2803 = vmax.xlane.f32.xlu1 %v5515_v21  ;;  %2801 = vmax.xlane.f32.xlu0 %v5512_v53 }
 0x47a   : > { %2835 = vmax.xlane.f32.xlu1 %v5523_v22  ;;  %2833 = vmax.xlane.f32.xlu0 %v5520_v35 }
 0x47e   : > { %2799 = vmax.xlane.f32.xlu1 %v5533_v45  ;;  %2797 = vmax.xlane.f32.xlu0 %v5530_v41 }
 0x482   : > { %2831 = vmax.xlane.f32.xlu1 %v5541_v28  ;;  %2829 = vmax.xlane.f32.xlu0 %v5538_v50 }
 0x486   : > { %2811 = vmax.xlane.f32.xlu1 %v5547_v36  ;;  %2809 = vmax.xlane.f32.xlu0 %v5544_v30 }
 0x48a   : > { %2807 = vmax.xlane.f32.xlu1 %v5557_v48  ;;  %2805 = vmax.xlane.f32.xlu0 %v5554_v43 }
 0x48e   : > { %2839 = vmax.xlane.f32.xlu1 %v5565_v59  ;;  %2837 = vmax.xlane.f32.xlu0 %v5562_v56 }
 0x492   : > { %2843 = vmax.xlane.f32.xlu1 %v5573_v61  ;;  %2841 = vmax.xlane.f32.xlu0 %v5570_v47 }
 0x4df   : > { %v2818_v37 = vpop.xlane.xlu0 %2817  ;;  %v2786_v5 = vpop.xlane.xlu1 %2785 }
 0x4e0   : > { %v5578_v42 = vsub.f32 %v5450_v2, %v2786_v5  ;;  %v5581_v1 = vsub.f32 %v5453_v54, %v2818_v37 }
 0x4e2   : > { %v2881_v6 = vmul.f32 1.442695, %v5578_v42  ;;  %v2913_v51 = vmul.f32 1.442695, %v5581_v1 }
 0x4e3   : > { %v2788_v4 = vpop.xlane.xlu1 %2787  ;;  %v2782_v12 = vpop.xlane.xlu0 %2781 }
 0x4e4   : > { %v5585_v13 = vsub.f32 %v5461_v7, %v2788_v4  ;;  %4329 = vpow2.f32 %v2881_v6  ;;  %v5589_v14 = vsub.f32 %v5458_v44, %v2782_v12 }
 0x4e6   : > { %v2883_v18 = vmul.f32 1.442695, %v5585_v13  ;;  %v2877_v7 = vmul.f32 1.442695, %v5589_v14 }
 0x4e7   : > { %v2820_v2 = vpop.xlane.xlu1 %2819  ;;  %v2814_v19 = vpop.xlane.xlu0 %2813 }
 0x4e8   : > { %4331 = vpow2.f32 %v2883_v18  ;;  %v5593_v54 = vsub.f32 %v5469_v0, %v2820_v2  ;;  %v5596_v20 = vsub.f32 %v5466_v49, %v2814_v19 }
 0x4e9   : > { %4333 = vpow2.f32 %v2913_v51 }
 0x4ea   : > { %v2915_v24 = vmul.f32 1.442695, %v5593_v54  ;;  %v2909_v44 = vmul.f32 1.442695, %v5596_v20 }
 0x4eb   : > { %v2816_v10 = vpop.xlane.xlu1 %2815  ;;  %v2784_v26 = vpop.xlane.xlu0 %2783 }
 0x4ec   : > { %4335 = vpow2.f32 %v2915_v24  ;;  %v5602_v31 = vsub.f32 %v5477_v57, %v2816_v10  ;;  %v5605_v58 = vsub.f32 %v5474_v9, %v2784_v26 }
 0x4ed   : > { %4337 = vpow2.f32 %v2877_v7 }
 0x4ee   : > { %v2879_v49 = vmul.f32 1.442695, %v5605_v58  ;;  %4339 = vpow2.f32 %v2909_v44  ;;  %v2911_v17 = vmul.f32 1.442695, %v5602_v31 }
 0x4ef   : > { %v2796_v0 = vpop.xlane.xlu1 %2795  ;;  %v2794_v16 = vpop.xlane.xlu0 %2793 }
 0x4f0   : > { %v5610_v52 = vsub.f32 %v5483_v8, %v2796_v0  ;;  %v5613_v11 = vsub.f32 %v5480_v60, %v2794_v16  ;;  %4341 = vpow2.f32 %v2879_v49 }
 0x4f1   : > { %v4330_v57 = vpop.eup %4329  ;;  %4343 = vpow2.f32 %v2911_v17 }
 0x4f2   : > { %v2889_v39 = vmul.f32 1.442695, %v5613_v11  ;;  %2945 = vadd.xlane.f32.xlu0 %v4330_v57  ;;  %v2891_v23 = vmul.f32 1.442695, %v5610_v52 }
 0x4f3   : > { %v2828_v9 = vpop.xlane.xlu1 %2827  ;;  %v2826_v40 = vpop.xlane.xlu0 %2825 }
 0x4f4   : > { %v5618_v27 = vsub.f32 %v5491_v3, %v2828_v9  ;;  %v5621_v46 = vsub.f32 %v5488_v25, %v2826_v40  ;;  %4345 = vpow2.f32 %v2889_v39 }
 0x4f5   : > { %v4332_v8 = vpop.eup %4331  ;;  %4347 = vpow2.f32 %v2891_v23 }
 0x4f6   : > { %v4334_v60 = vpop.eup %4333  ;;  %v2921_v32 = vmul.f32 1.442695, %v5621_v46  ;;  %2947 = vadd.xlane.f32.xlu1 %v4332_v8  ;;  %v2923_v33 = vmul.f32 1.442695, %v5618_v27 }
 0x4f7   : > { %2977 = vadd.xlane.f32.xlu0 %v4334_v60  ;;  %v2792_v29 = vpop.xlane.xlu1 %2791  ;;  %v2790_v38 = vpop.xlane.xlu0 %2789 }
 0x4f8   : > { %v5626_v34 = vsub.f32 %v5501_v55, %v2792_v29  ;;  %v5629_v3 = vsub.f32 %v5498_v15, %v2790_v38  ;;  %4349 = vpow2.f32 %v2921_v32 }
 0x4f9   : > { %v4336_v25 = vpop.eup %4335  ;;  %4351 = vpow2.f32 %v2923_v33 }
 0x4fa   : > { %v4338_v37 = vpop.eup %4337  ;;  %v2885_v5 = vmul.f32 1.442695, %v5629_v3  ;;  %2979 = vadd.xlane.f32.xlu1 %v4336_v25  ;;  %v2887_v12 = vmul.f32 1.442695, %v5626_v34 }
 0x4fb   : > { %2941 = vadd.xlane.f32.xlu0 %v4338_v37  ;;  %v2824_v6 = vpop.xlane.xlu1 %2823  ;;  %v2822_v4 = vpop.xlane.xlu0 %2821 }
 0x4fc   : > { %v5634_v51 = vsub.f32 %v5509_v63, %v2824_v6  ;;  %v5637_v55 = vsub.f32 %v5506_v62, %v2822_v4  ;;  %v4340_v15 = vpop.eup %4339  ;;  %4353 = vpow2.f32 %v2885_v5 }
 0x4fd   : > { %v4342_v18 = vpop.eup %4341  ;;  %4355 = vpow2.f32 %v2887_v12 }
 0x4fe   : > { %v2917_v2 = vmul.f32 1.442695, %v5637_v55  ;;  %2943 = vadd.xlane.f32.xlu1 %v4342_v18  ;;  %v2919_v24 = vmul.f32 1.442695, %v5634_v51  ;;  %v4344_v62 = vpop.eup %4343 }
 0x4ff   : > { %2973 = vadd.xlane.f32.xlu0 %v4340_v15  ;;  %v2804_v19 = vpop.xlane.xlu1 %2803  ;;  %v2802_v7 = vpop.xlane.xlu0 %2801 }
 0x500   : > { %v5642_v10 = vsub.f32 %v5515_v21, %v2804_v19  ;;  %v5645_v63 = vsub.f32 %v5512_v53, %v2802_v7  ;;  %4357 = vpow2.f32 %v2917_v2 }
 0x501   : > { %v4346_v26 = vpop.eup %4345  ;;  %4359 = vpow2.f32 %v2919_v24 }
 0x502   : > { %v2897_v44 = vmul.f32 1.442695, %v5645_v63  ;;  %2975 = vadd.xlane.f32.xlu1 %v4344_v62  ;;  %v2899_v16 = vmul.f32 1.442695, %v5642_v10  ;;  %v4348_v53 = vpop.eup %4347 }
 0x503   : > { %2953 = vadd.xlane.f32.xlu0 %v4346_v26  ;;  %v2836_v49 = vpop.xlane.xlu1 %2835  ;;  %v2834_v0 = vpop.xlane.xlu0 %2833 }
 0x504   : > { %v5650_v17 = vsub.f32 %v5523_v22, %v2836_v49  ;;  %v5653_v21 = vsub.f32 %v5520_v35, %v2834_v0  ;;  %4361 = vpow2.f32 %v2897_v44 }
 0x505   : > { %v4350_v57 = vpop.eup %4349  ;;  %4363 = vpow2.f32 %v2899_v16 }
 0x506   : > { %v2929_v39 = vmul.f32 1.442695, %v5653_v21  ;;  %2955 = vadd.xlane.f32.xlu1 %v4348_v53  ;;  %v2931_v23 = vmul.f32 1.442695, %v5650_v17  ;;  %v4352_v35 = vpop.eup %4351 }
 0x507   : > { %2985 = vadd.xlane.f32.xlu0 %v4350_v57  ;;  %v2800_v9 = vpop.xlane.xlu1 %2799  ;;  %v2798_v40 = vpop.xlane.xlu0 %2797 }
 0x508   : > { %v5658_v8 = vsub.f32 %v5533_v45, %v2800_v9  ;;  %v5661_v22 = vsub.f32 %v5530_v41, %v2798_v40  ;;  %4365 = vpow2.f32 %v2929_v39 }
 0x509   : > { %v4354_v60 = vpop.eup %4353  ;;  %4367 = vpow2.f32 %v2931_v23 }
 0x50a   : > { %v2893_v32 = vmul.f32 1.442695, %v5661_v22  ;;  %2987 = vadd.xlane.f32.xlu1 %v4352_v35  ;;  %v2895_v33 = vmul.f32 1.442695, %v5658_v8  ;;  %v4356_v41 = vpop.eup %4355 }
 0x50b   : > { %2949 = vadd.xlane.f32.xlu0 %v4354_v60  ;;  %v2832_v29 = vpop.xlane.xlu1 %2831  ;;  %v2830_v38 = vpop.xlane.xlu0 %2829 }
 0x50c   : > { %v5666_v25 = vsub.f32 %v5541_v28, %v2832_v29  ;;  %v5669_v45 = vsub.f32 %v5538_v50, %v2830_v38  ;;  %4369 = vpow2.f32 %v2893_v32 }
 0x50d   : > { %v4358_v37 = vpop.eup %4357  ;;  %4371 = vpow2.f32 %v2895_v33 }
 0x50e   : > { %v2925_v5 = vmul.f32 1.442695, %v5669_v45  ;;  %2951 = vadd.xlane.f32.xlu1 %v4356_v41  ;;  %v2927_v12 = vmul.f32 1.442695, %v5666_v25  ;;  %v4360_v50 = vpop.eup %4359 }
 0x50f   : > { %2981 = vadd.xlane.f32.xlu0 %v4358_v37  ;;  %v2812_v6 = vpop.xlane.xlu1 %2811  ;;  %v2810_v4 = vpop.xlane.xlu0 %2809 }
 0x510   : > { %v5674_v15 = vsub.f32 %v5547_v36, %v2812_v6  ;;  %v5677_v28 = vsub.f32 %v5544_v30, %v2810_v4  ;;  %4373 = vpow2.f32 %v2925_v5 }
 0x511   : > { %v4362_v18 = vpop.eup %4361  ;;  %4375 = vpow2.f32 %v2927_v12 }
 0x512   : > { %v2905_v2 = vmul.f32 1.442695, %v5677_v28  ;;  %2983 = vadd.xlane.f32.xlu1 %v4360_v50  ;;  %v2907_v24 = vmul.f32 1.442695, %v5674_v15  ;;  %v4364_v30 = vpop.eup %4363 }
 0x513   : > { %2961 = vadd.xlane.f32.xlu0 %v4362_v18  ;;  %v2808_v19 = vpop.xlane.xlu1 %2807  ;;  %v2806_v7 = vpop.xlane.xlu0 %2805 }
 0x514   : > { %v5682_v62 = vsub.f32 %v5557_v48, %v2808_v19  ;;  %v5685_v36 = vsub.f32 %v5554_v43, %v2806_v7  ;;  %4377 = vpow2.f32 %v2905_v2 }
 0x515   : > { %v4366_v26 = vpop.eup %4365  ;;  %4379 = vpow2.f32 %v2907_v24 }
 0x516   : > { %v2901_v44 = vmul.f32 1.442695, %v5685_v36  ;;  %2963 = vadd.xlane.f32.xlu1 %v4364_v30  ;;  %v2903_v16 = vmul.f32 1.442695, %v5682_v62  ;;  %v4368_v43 = vpop.eup %4367 }
 0x517   : > { %2993 = vadd.xlane.f32.xlu0 %v4366_v26  ;;  %v2840_v49 = vpop.xlane.xlu1 %2839  ;;  %v2838_v0 = vpop.xlane.xlu0 %2837 }
 0x518   : > { %v5690_v53 = vsub.f32 %v5565_v59, %v2840_v49  ;;  %v5693_v48 = vsub.f32 %v5562_v56, %v2838_v0  ;;  %4381 = vpow2.f32 %v2901_v44 }
 0x519   : > { %v4370_v57 = vpop.eup %4369  ;;  %4383 = vpow2.f32 %v2903_v16 }
 0x51a   : > { %v2933_v39 = vmul.f32 1.442695, %v5693_v48  ;;  %2995 = vadd.xlane.f32.xlu1 %v4368_v43  ;;  %v2935_v23 = vmul.f32 1.442695, %v5690_v53  ;;  %v4372_v59 = vpop.eup %4371 }
 0x51b   : > { %2957 = vadd.xlane.f32.xlu0 %v4370_v57  ;;  %v2844_v9 = vpop.xlane.xlu1 %2843  ;;  %v2842_v40 = vpop.xlane.xlu0 %2841 }
 0x51c   : > { %v5698_v35 = vsub.f32 %v5570_v47, %v2842_v40  ;;  %4385 = vpow2.f32 %v2933_v39  ;;  %v5701_v56 = vsub.f32 %v5573_v61, %v2844_v9 }
 0x51d   : > { %v4374_v60 = vpop.eup %4373  ;;  %4387 = vpow2.f32 %v2935_v23 }
 0x51e   : > { %v2937_v32 = vmul.f32 1.442695, %v5698_v35  ;;  %2959 = vadd.xlane.f32.xlu1 %v4372_v59  ;;  %v4376_v29 = vpop.eup %4375  ;;  %v2939_v38 = vmul.f32 1.442695, %v5701_v56 }
 0x51f   : > { %2989 = vadd.xlane.f32.xlu0 %v4374_v60 }
 0x520   : > { %4389 = vpow2.f32 %v2937_v32 }
 0x521   : > { %v4378_v33 = vpop.eup %4377  ;;  %4391 = vpow2.f32 %v2939_v38 }
 0x522   : > { %2991 = vadd.xlane.f32.xlu1 %v4376_v29  ;;  %v4380_v47 = vpop.eup %4379 }
 0x523   : > { %2969 = vadd.xlane.f32.xlu0 %v4378_v33 }
 0x525   : > { %v4382_v41 = vpop.eup %4381 }
 0x526   : > { %2971 = vadd.xlane.f32.xlu1 %v4380_v47  ;;  %v4384_v61 = vpop.eup %4383 }
 0x527   : > { %2965 = vadd.xlane.f32.xlu0 %v4382_v41 }
 0x529   : > { %v4386_v37 = vpop.eup %4385 }
 0x52a   : > { %2967 = vadd.xlane.f32.xlu1 %v4384_v61  ;;  %v4388_v5 = vpop.eup %4387 }
 0x52b   : > { %2997 = vadd.xlane.f32.xlu0 %v4386_v37 }
 0x52d   : > { %v4390_v6 = vpop.eup %4389 }
 0x52e   : > { %2999 = vadd.xlane.f32.xlu1 %v4388_v5  ;;  %v4392_v4 = vpop.eup %4391 }
 0x52f   : > { %3001 = vadd.xlane.f32.xlu0 %v4390_v6 }
 0x532   : > { %3003 = vadd.xlane.f32.xlu1 %v4392_v4 }
 0x57b   : > { %v2946_v12 = vpop.xlane.xlu0 %2945 }
 0x57c   : > { %4393 = vlog2.f32 %v2946_v12 }
 0x57f   : > { %v2948_v50 = vpop.xlane.xlu1 %2947 }
 0x580   : > { %4395 = vlog2.f32 %v2948_v50  ;;  %v2978_v18 = vpop.xlane.xlu0 %2977 }
 0x581   : > { %4397 = vlog2.f32 %v2978_v18 }
 0x583   : > { %v2980_v2 = vpop.xlane.xlu1 %2979 }
 0x584   : > { %4399 = vlog2.f32 %v2980_v2  ;;  %v2942_v19 = vpop.xlane.xlu0 %2941 }
 0x585   : > { %4401 = vlog2.f32 %v2942_v19 }
 0x587   : > { %v2944_v7 = vpop.xlane.xlu1 %2943 }
 0x588   : > { %v2974_v24 = vpop.xlane.xlu0 %2973  ;;  %4403 = vlog2.f32 %v2944_v7 }
 0x589   : > { %v4394_v30 = vpop.eup %4393  ;;  %4405 = vlog2.f32 %v2974_v24 }
 0x58a   : > { %v3010_v26 = vmul.f32 0.6931472, %v4394_v30 }
 0x58b   : > { %v2976_v44 = vpop.xlane.xlu1 %2975 }
 0x58c   : > { %v2954_v49 = vpop.xlane.xlu0 %2953  ;;  %v3071_v16 = vsub.f32 %v5578_v42, %v3010_v26  ;;  %4407 = vlog2.f32 %v2976_v44 }
 0x58d   : > { %v4396_v0 = vpop.eup %4395  ;;  %4409 = vlog2.f32 %v2954_v49 }
 0x58e   : > { %v4398_v43 = vpop.eup %4397  ;;  %v3012_v57 = vmul.f32 0.6931472, %v4396_v0  ;;  %3103 = vst [vmem:[%s4610_s20 + $0x10] sm:$0xff] %v3071_v16 }
 0x58f   : > { %v3042_v39 = vmul.f32 0.6931472, %v4398_v43  ;;  %v2956_v40 = vpop.xlane.xlu1 %2955 }
 0x590   : > { %v3072_v9 = vsub.f32 %v5585_v13, %v3012_v57  ;;  %v2986_v23 = vpop.xlane.xlu0 %2985  ;;  %4411 = vlog2.f32 %v2956_v40 }
 0x591   : > { %v4400_v59 = vpop.eup %4399  ;;  %v3087_v60 = vsub.f32 %v5581_v1, %v3042_v39  ;;  %4413 = vlog2.f32 %v2986_v23 }
 0x592   : > { %v4402_v32 = vpop.eup %4401  ;;  %3104 = vst [vmem:[%s4610_s20 + $0x18] sm:$0xff] %v3072_v9  ;;  %v3044_v42 = vmul.f32 0.6931472, %v4400_v59 }
 0x593   : > { %3119 = vst [vmem:[%s4610_s20 + $0x90] sm:$0xff] %v3087_v60  ;;  %v3006_v29 = vmul.f32 0.6931472, %v4402_v32  ;;  %v2988_v33 = vpop.xlane.xlu1 %2987 }
 0x594   : > { %v3088_v38 = vsub.f32 %v5593_v54, %v3044_v42  ;;  %v2950_v47 = vpop.xlane.xlu0 %2949  ;;  %4415 = vlog2.f32 %v2988_v33 }
 0x595   : > { %v3069_v13 = vsub.f32 %v5589_v14, %v3006_v29  ;;  %v4404_v41 = vpop.eup %4403  ;;  %4417 = vlog2.f32 %v2950_v47 }
 0x596   : > { %3120 = vst [vmem:[%s4610_s20 + $0x98] sm:$0xff] %v3088_v38  ;;  %v4406_v1 = vpop.eup %4405  ;;  %v3008_v61 = vmul.f32 0.6931472, %v4404_v41 }
 0x597   : > { %3101 = vst [vmem:[%s4610_s20] sm:$0xff] %v3069_v13  ;;  %v3038_v37 = vmul.f32 0.6931472, %v4406_v1  ;;  %v2952_v5 = vpop.xlane.xlu1 %2951 }
 0x598   : > { %v2982_v6 = vpop.xlane.xlu0 %2981  ;;  %v3070_v4 = vsub.f32 %v5605_v58, %v3008_v61  ;;  %4419 = vlog2.f32 %v2952_v5 }
 0x599   : > { %v4408_v54 = vpop.eup %4407  ;;  %v3085_v12 = vsub.f32 %v5596_v20, %v3038_v37  ;;  %4421 = vlog2.f32 %v2982_v6 }
 0x59a   : > { %v4410_v14 = vpop.eup %4409  ;;  %3102 = vst [vmem:[%s4610_s20 + $0x8] sm:$0xff] %v3070_v4  ;;  %v3040_v50 = vmul.f32 0.6931472, %v4408_v54 }
 0x59b   : > { %3117 = vst [vmem:[%s4610_s20 + $0x80] sm:$0xff] %v3085_v12  ;;  %v3018_v18 = vmul.f32 0.6931472, %v4410_v14  ;;  %v2984_v2 = vpop.xlane.xlu1 %2983 }
 0x59c   : > { %v2962_v19 = vpop.xlane.xlu0 %2961  ;;  %v3086_v7 = vsub.f32 %v5602_v31, %v3040_v50  ;;  %4423 = vlog2.f32 %v2984_v2 }
 0x59d   : > { %v4412_v24 = vpop.eup %4411  ;;  %v3075_v58 = vsub.f32 %v5613_v11, %v3018_v18  ;;  %4425 = vlog2.f32 %v2962_v19 }
 0x59e   : > { %v4414_v30 = vpop.eup %4413  ;;  %3118 = vst [vmem:[%s4610_s20 + $0x88] sm:$0xff] %v3086_v7  ;;  %v3020_v20 = vmul.f32 0.6931472, %v4412_v24 }
 0x59f   : > { %3107 = vst [vmem:[%s4610_s20 + $0x30] sm:$0xff] %v3075_v58  ;;  %v3050_v26 = vmul.f32 0.6931472, %v4414_v30  ;;  %v2964_v44 = vpop.xlane.xlu1 %2963 }
 0x5a0   : > { %v2994_v49 = vpop.xlane.xlu0 %2993  ;;  %v3076_v0 = vsub.f32 %v5610_v52, %v3020_v20  ;;  %4427 = vlog2.f32 %v2964_v44 }
 0x5a1   : > { %v4416_v16 = vpop.eup %4415  ;;  %v3091_v31 = vsub.f32 %v5621_v46, %v3050_v26  ;;  %4429 = vlog2.f32 %v2994_v49 }
 0x5a2   : > { %v4418_v43 = vpop.eup %4417  ;;  %3108 = vst [vmem:[%s4610_s20 + $0x38] sm:$0xff] %v3076_v0  ;;  %v3052_v11 = vmul.f32 0.6931472, %v4416_v16 }
 0x5a3   : > { %3123 = vst [vmem:[%s4610_s20 + $0xb0] sm:$0xff] %v3091_v31  ;;  %v3014_v57 = vmul.f32 0.6931472, %v4418_v43  ;;  %v2996_v39 = vpop.xlane.xlu1 %2995 }
 0x5a4   : > { %v2958_v9 = vpop.xlane.xlu0 %2957  ;;  %v3092_v40 = vsub.f32 %v5618_v27, %v3052_v11  ;;  %4431 = vlog2.f32 %v2996_v39 }
 0x5a5   : > { %v4420_v23 = vpop.eup %4419  ;;  %v3073_v52 = vsub.f32 %v5629_v3, %v3014_v57  ;;  %4433 = vlog2.f32 %v2958_v9 }
 0x5a6   : > { %v4422_v59 = vpop.eup %4421  ;;  %3124 = vst [vmem:[%s4610_s20 + $0xb8] sm:$0xff] %v3092_v40  ;;  %v3016_v46 = vmul.f32 0.6931472, %v4420_v23 }
 0x5a7   : > { %3105 = vst [vmem:[%s4610_s20 + $0x20] sm:$0xff] %v3073_v52  ;;  %v3046_v60 = vmul.f32 0.6931472, %v4422_v59  ;;  %v2960_v32 = vpop.xlane.xlu1 %2959 }
 0x5a8   : > { %v2990_v42 = vpop.xlane.xlu0 %2989  ;;  %v3074_v29 = vsub.f32 %v5626_v34, %v3016_v46  ;;  %4435 = vlog2.f32 %v2960_v32 }
 0x5a9   : > { %v4424_v38 = vpop.eup %4423  ;;  %v3089_v27 = vsub.f32 %v5637_v55, %v3046_v60  ;;  %4437 = vlog2.f32 %v2990_v42 }
 0x5aa   : > { %v4426_v33 = vpop.eup %4425  ;;  %3106 = vst [vmem:[%s4610_s20 + $0x28] sm:$0xff] %v3074_v29  ;;  %v3048_v3 = vmul.f32 0.6931472, %v4424_v38 }
 0x5ab   : > { %3121 = vst [vmem:[%s4610_s20 + $0xa0] sm:$0xff] %v3089_v27  ;;  %v3026_v47 = vmul.f32 0.6931472, %v4426_v33  ;;  %v2992_v13 = vpop.xlane.xlu1 %2991 }
 0x5ac   : > { %v2970_v41 = vpop.xlane.xlu0 %2969  ;;  %v3090_v1 = vsub.f32 %v5634_v51, %v3048_v3  ;;  %4439 = vlog2.f32 %v2992_v13 }
 0x5ad   : > { %v4428_v61 = vpop.eup %4427  ;;  %v3079_v34 = vsub.f32 %v5645_v63, %v3026_v47  ;;  %4441 = vlog2.f32 %v2970_v41 }
 0x5ae   : > { %v4430_v37 = vpop.eup %4429  ;;  %3122 = vst [vmem:[%s4610_s20 + $0xa8] sm:$0xff] %v3090_v1  ;;  %v3028_v55 = vmul.f32 0.6931472, %v4428_v61 }
 0x5af   : > { %3111 = vst [vmem:[%s4610_s20 + $0x50] sm:$0xff] %v3079_v34  ;;  %v3058_v5 = vmul.f32 0.6931472, %v4430_v37  ;;  %v2972_v6 = vpop.xlane.xlu1 %2971 }
 0x5b0   : > { %v2966_v4 = vpop.xlane.xlu0 %2965  ;;  %v3080_v54 = vsub.f32 %v5642_v10, %v3028_v55  ;;  %4443 = vlog2.f32 %v2972_v6 }
 0x5b1   : > { %v4432_v12 = vpop.eup %4431  ;;  %v3095_v51 = vsub.f32 %v5653_v21, %v3058_v5  ;;  %4445 = vlog2.f32 %v2966_v4 }
 0x5b2   : > { %v4434_v14 = vpop.eup %4433  ;;  %3112 = vst [vmem:[%s4610_s20 + $0x58] sm:$0xff] %v3080_v54  ;;  %v3060_v63 = vmul.f32 0.6931472, %v4432_v12 }
 0x5b3   : > { %3127 = vst [vmem:[%s4610_s20 + $0xd0] sm:$0xff] %v3095_v51  ;;  %v3022_v50 = vmul.f32 0.6931472, %v4434_v14  ;;  %v2968_v18 = vpop.xlane.xlu1 %2967 }
 0x5b4   : > { %v2998_v2 = vpop.xlane.xlu0 %2997  ;;  %v3096_v19 = vsub.f32 %v5650_v17, %v3060_v63  ;;  %4447 = vlog2.f32 %v2968_v18 }
 0x5b5   : > { %v4436_v7 = vpop.eup %4435  ;;  %v3077_v10 = vsub.f32 %v5661_v22, %v3022_v50  ;;  %4449 = vlog2.f32 %v2998_v2 }
 0x5b6   : > { %v4438_v24 = vpop.eup %4437  ;;  %3128 = vst [vmem:[%s4610_s20 + $0xd8] sm:$0xff] %v3096_v19  ;;  %v3024_v21 = vmul.f32 0.6931472, %v4436_v7 }
 0x5b7   : > { %3109 = vst [vmem:[%s4610_s20 + $0x40] sm:$0xff] %v3077_v10  ;;  %v3054_v58 = vmul.f32 0.6931472, %v4438_v24  ;;  %v3000_v30 = vpop.xlane.xlu1 %2999 }
 0x5b8   : > { %v3002_v20 = vpop.xlane.xlu0 %3001  ;;  %v3078_v26 = vsub.f32 %v5658_v8, %v3024_v21  ;;  %4451 = vlog2.f32 %v3000_v30 }
 0x5b9   : > { %v4440_v44 = vpop.eup %4439  ;;  %v3093_v17 = vsub.f32 %v5669_v45, %v3054_v58  ;;  %4453 = vlog2.f32 %v3002_v20 }
 0x5ba   : > { %v4442_v49 = vpop.eup %4441  ;;  %3110 = vst [vmem:[%s4610_s20 + $0x48] sm:$0xff] %v3078_v26  ;;  %v3056_v22 = vmul.f32 0.6931472, %v4440_v44 }
 0x5bb   : > { %3125 = vst [vmem:[%s4610_s20 + $0xc0] sm:$0xff] %v3093_v17  ;;  %v3034_v0 = vmul.f32 0.6931472, %v4442_v49  ;;  %v3004_v16 = vpop.xlane.xlu1 %3003 }
 0x5bc   : > { %v3094_v31 = vsub.f32 %v5666_v25, %v3056_v22  ;;  %4455 = vlog2.f32 %v3004_v16 }
 0x5bd   : > { %v4444_v43 = vpop.eup %4443  ;;  %v3083_v8 = vsub.f32 %v5677_v28, %v3034_v0 }
 0x5be   : > { %v4446_v11 = vpop.eup %4445  ;;  %3126 = vst [vmem:[%s4610_s20 + $0xc8] sm:$0xff] %v3094_v31  ;;  %v3036_v57 = vmul.f32 0.6931472, %v4444_v43 }
 0x5bf   : > { %3115 = vst [vmem:[%s4610_s20 + $0x70] sm:$0xff] %v3083_v8  ;;  %v3030_v45 = vmul.f32 0.6931472, %v4446_v11 }
 0x5c0   : > { %v3084_v39 = vsub.f32 %v5674_v15, %v3036_v57 }
 0x5c1   : > { %v4448_v9 = vpop.eup %4447  ;;  %v3081_v40 = vsub.f32 %v5685_v36, %v3030_v45 }
 0x5c2   : > { %v4450_v23 = vpop.eup %4449  ;;  %3116 = vst [vmem:[%s4610_s20 + $0x78] sm:$0xff] %v3084_v39  ;;  %v3032_v25 = vmul.f32 0.6931472, %v4448_v9 }
 0x5c3   : > { %3113 = vst [vmem:[%s4610_s20 + $0x60] sm:$0xff] %v3081_v40  ;;  %v3062_v52 = vmul.f32 0.6931472, %v4450_v23 }
 0x5c4   : > { %v3082_v28 = vsub.f32 %v5682_v62, %v3032_v25 }
 0x5c5   : > { %v4452_v59 = vpop.eup %4451  ;;  %v3097_v46 = vsub.f32 %v5693_v48, %v3062_v52 }
 0x5c6   : > { %v4454_v60 = vpop.eup %4453  ;;  %3114 = vst [vmem:[%s4610_s20 + $0x68] sm:$0xff] %v3082_v28  ;;  %v3064_v32 = vmul.f32 0.6931472, %v4452_v59 }
 0x5c7   : > { %3129 = vst [vmem:[%s4610_s20 + $0xe0] sm:$0xff] %v3097_v46  ;;  %v3066_v15 = vmul.f32 0.6931472, %v4454_v60 }
 0x5c8   : > { %v3098_v36 = vsub.f32 %v5690_v53, %v3064_v32 }
 0x5c9   : > { %v4456_v42 = vpop.eup %4455  ;;  %v3099_v29 = vsub.f32 %v5698_v35, %v3066_v15 }
 0x5ca   : > { %3130 = vst [vmem:[%s4610_s20 + $0xe8] sm:$0xff] %v3098_v36  ;;  %v3068_v38 = vmul.f32 0.6931472, %v4456_v42 }
 0x5cb   : > { %3131 = vst [vmem:[%s4610_s20 + $0xf0] sm:$0xff] %v3099_v29 }
 0x5cc   : > { %v3100_v27 = vsub.f32 %v5701_v56, %v3068_v38 }
 0x5ce   : > { %3132 = vst [vmem:[%s4610_s20 + $0xf8] sm:$0xff] %v3100_v27 }
 0x5cf PF: > { %s19_s13 = sadd.s32 1, %s4495_s13   ;;  %s5852_s30 = sld [smem:[#allocation9_spill]] }
 0x5d0   : > { %p16_p7 = scmp.ge.s32.totalorder %s19_s13, 8   ;;  %s5853_s10 = sld [smem:[#allocation10_spill]] }
 0x5d1   : > { %s5854_s11 = sld [smem:[#allocation11_spill]] }
 0x5d2   : > { %s5855_s12 = sld [smem:[#allocation12_spill]]  ;;  %18 = sbr.rel (!%p16_p7) target bundleno = 3 (0x3), region = 133 }

</bundles_post_ra>
